<compile_context>
chip_gen: v7x
topology: tpu7x:2x2x1
jax: 0.10.0
libtpu: 0.0.40
codegen_flags: <defaults>
</compile_context>

<pallas_src>
import numpy as np
import jax
import jax.numpy as jnp
from jax.experimental import pallas as pl
from jax.experimental.pallas import tpu as pltpu


def _sigmoid(x):
    return 1.0 / (1.0 + jnp.exp(-x))


def _char_lstm_kernel(x_ref, h0_ref, c0_ref, wih_ref, whh_ref, b_ref,
                      wfc_ref, bfc_ref, out_ref, hn_ref, cn_ref, x_scratch):
    """Multi-layer LSTM + output projection, layer-major.

    x_ref   : (S*B, H)     time-major flattened embedded input (row = t*B + b)
    h0_ref  : (L, B, H)    initial hidden state
    c0_ref  : (L, B, H)    initial cell state
    wih_ref : (L, H, 4H)   input->hidden weights, pre-transposed (x @ W), gates (i,f,g,o)
    whh_ref : (L, H, 4H)   hidden->hidden weights, pre-transposed
    b_ref   : (L, 1, 4H)   b_ih + b_hh (pre-added)
    wfc_ref : (H, O)       fc weight, pre-transposed
    bfc_ref : (1, O)       fc bias
    out_ref : (S*B, O)     per-timestep logits (top layer -> fc)
    hn_ref  : (L, B, H)    final hidden state
    cn_ref  : (L, B, H)    final cell state
    x_scratch: VMEM (S*B, H)  current layer's input/output sequence
    """
    L, B, H = h0_ref.shape
    SB = x_ref.shape[0]
    S = SB // B

    # Layer-0 input sequence.
    x_scratch[...] = x_ref[...]

    for l in range(L):                                   # static, unrolled
        # Bulk input projection for ALL timesteps (off the serial chain).
        xproj = (jnp.dot(x_scratch[...], wih_ref[l],
                         preferred_element_type=jnp.float32)
                 + b_ref[l])                             # (S*B, 4H)

        h = h0_ref[l]                                    # (B, H)
        c = c0_ref[l]                                    # (B, H)
        w_hh = whh_ref[l]                                # (H, 4H)

        for t in range(S):                               # static, unrolled
            gates = (xproj[t * B:(t + 1) * B, :]
                     + jnp.dot(h, w_hh, preferred_element_type=jnp.float32))
            i_g = _sigmoid(gates[:, 0 * H:1 * H])
            f_g = _sigmoid(gates[:, 1 * H:2 * H])
            g_g = jnp.tanh(gates[:, 2 * H:3 * H])
            o_g = _sigmoid(gates[:, 3 * H:4 * H])
            c = f_g * c + i_g * g_g
            h = o_g * jnp.tanh(c)
            # This layer's output at time t becomes next layer's input.
            x_scratch[t * B:(t + 1) * B, :] = h

        hn_ref[l] = h
        cn_ref[l] = c

    # Hoisted fc projection: one bulk matmul + one store.
    out_ref[...] = (jnp.dot(x_scratch[...], wfc_ref[...],
                            preferred_element_type=jnp.float32)
                    + bfc_ref[...]).astype(out_ref.dtype)


def char_lstm_forward(input_ids, hidden, params):
    """Equivalent of CharLSTM.forward(input, hidden).

    input_ids: (B, S) int32 token indices
    hidden   : tuple (h0, c0), each (L, B, H) float32
    returns  : (output (B, S, O), (hn, cn))
    """
    emb_table, wih_t, whh_t, b, wfc_t, bfc = params
    h0, c0 = hidden
    L, B, H = h0.shape
    S = input_ids.shape[1]
    O = wfc_t.shape[1]

    # Embedding lookup (gather) as JAX glue, then time-major flattened rows.
    embedded = emb_table[input_ids]                       # (B, S, H)
    x = jnp.transpose(embedded, (1, 0, 2)).reshape(S * B, H)

    vmem = pl.BlockSpec(memory_space=pltpu.MemorySpace.VMEM)
    out2d, hn, cn = pl.pallas_call(
        _char_lstm_kernel,
        out_shape=(jax.ShapeDtypeStruct((S * B, O), jnp.float32),
                   jax.ShapeDtypeStruct((L, B, H), jnp.float32),
                   jax.ShapeDtypeStruct((L, B, H), jnp.float32)),
        in_specs=[vmem] * 8,
        out_specs=(vmem, vmem, vmem),
        scratch_shapes=[pltpu.VMEM((S * B, H), jnp.float32)],
    )(x, h0, c0, wih_t, whh_t, b, wfc_t, bfc)

    output = jnp.transpose(out2d.reshape(S, B, O), (1, 0, 2))   # (B, S, O)
    return output, (hn, cn)


def init_params(key, input_size, hidden_size, output_size, num_layers):
    """Deterministic parameter init matching PyTorch module shapes (gate order i,f,g,o)."""
    ks = jax.random.split(key, 7)
    H = hidden_size
    k = 1.0 / np.sqrt(H)
    emb_table = jax.random.normal(ks[0], (input_size, H), jnp.float32)
    # nn.LSTM weights are (4H, H); pre-transpose so the kernel does x @ W.
    wih_t = jax.random.uniform(ks[1], (num_layers, H, 4 * H), jnp.float32, -k, k)
    whh_t = jax.random.uniform(ks[2], (num_layers, H, 4 * H), jnp.float32, -k, k)
    bih = jax.random.uniform(ks[3], (num_layers, 1, 4 * H), jnp.float32, -k, k)
    bhh = jax.random.uniform(ks[4], (num_layers, 1, 4 * H), jnp.float32, -k, k)
    b = bih + bhh                                         # pre-added biases
    wfc_t = jax.random.uniform(ks[5], (H, output_size), jnp.float32, -k, k)
    bfc = jax.random.uniform(ks[6], (1, output_size), jnp.float32, -k, k)
    return (emb_table, wih_t, whh_t, b, wfc_t, bfc)


def char_lstm_reference(input_ids, hidden, params):
    """Pure-JAX reference of the same LSTM forward pass (for verification)."""
    emb_table, wih_t, whh_t, b, wfc_t, bfc = params
    h0, c0 = hidden
    L, B, H = h0.shape
    S = input_ids.shape[1]
    x_seq = emb_table[input_ids]                          # (B, S, H)
    h = [h0[l] for l in range(L)]
    c = [c0[l] for l in range(L)]
    outs = []
    for t in range(S):
        x = x_seq[:, t, :]
        for l in range(L):
            gates = x @ wih_t[l] + b[l] + h[l] @ whh_t[l]
            i_g = _sigmoid(gates[:, 0 * H:1 * H])
            f_g = _sigmoid(gates[:, 1 * H:2 * H])
            g_g = jnp.tanh(gates[:, 2 * H:3 * H])
            o_g = _sigmoid(gates[:, 3 * H:4 * H])
            c[l] = f_g * c[l] + i_g * g_g
            h[l] = o_g * jnp.tanh(c[l])
            x = h[l]
        outs.append(x @ wfc_t + bfc)
    return jnp.stack(outs, axis=1), (jnp.stack(h, axis=0), jnp.stack(c, axis=0))


if __name__ == "__main__":
    # Small shapes consistent with the module.
    input_size = 16    # vocab
    hidden_size = 32
    output_size = 16
    num_layers = 2
    batch = 2
    seq = 8

    key = jax.random.PRNGKey(0)
    kp, ki = jax.random.split(key)
    params = init_params(kp, input_size, hidden_size, output_size, num_layers)

    input_ids = jax.random.randint(ki, (batch, seq), 0, input_size, jnp.int32)
    # init_hidden: (h0, c0) of zeros.
    hidden0 = (jnp.zeros((num_layers, batch, hidden_size), jnp.float32),
               jnp.zeros((num_layers, batch, hidden_size), jnp.float32))

    out, (hn, cn) = char_lstm_forward(input_ids, hidden0, params)
    out = jax.block_until_ready(out)
    hn = jax.block_until_ready(hn)
    cn = jax.block_until_ready(cn)

    # Sanity check against pure-JAX reference.
    ref_out, (ref_hn, ref_cn) = char_lstm_reference(input_ids, hidden0, params)
    np.testing.assert_allclose(np.asarray(out), np.asarray(ref_out),
                               rtol=1e-3, atol=1e-3)
    np.testing.assert_allclose(np.asarray(hn), np.asarray(ref_hn),
                               rtol=1e-3, atol=1e-3)
    np.testing.assert_allclose(np.asarray(cn), np.asarray(ref_cn),
                               rtol=1e-3, atol=1e-3)

    assert out.shape == (batch, seq, output_size)
    assert hn.shape == (num_layers, batch, hidden_size)
    assert cn.shape == (num_layers, batch, hidden_size)
    print("KERNEL_OK")
</pallas_src>

<mosaic_0001>
module attributes {stable_mosaic.version = 11 : i64} {
  func.func @_char_lstm_kernel(%arg0: memref<16x32xf32, #tpu.memory_space<vmem>>, %arg1: memref<2x2x32xf32, #tpu.memory_space<vmem>>, %arg2: memref<2x2x32xf32, #tpu.memory_space<vmem>>, %arg3: memref<2x32x128xf32, #tpu.memory_space<vmem>>, %arg4: memref<2x32x128xf32, #tpu.memory_space<vmem>>, %arg5: memref<2x1x128xf32, #tpu.memory_space<vmem>>, %arg6: memref<32x16xf32, #tpu.memory_space<vmem>>, %arg7: memref<1x16xf32, #tpu.memory_space<vmem>>, %arg8: memref<16x16xf32, #tpu.memory_space<vmem>>, %arg9: memref<2x2x32xf32, #tpu.memory_space<vmem>>, %arg10: memref<2x2x32xf32, #tpu.memory_space<vmem>>, %arg11: memref<16x32xf32, #tpu.memory_space<vmem>>) attributes {dimension_semantics = [], scalar_prefetch = 0 : i64, scratch_operands = 1 : i64, tpu.core_type = #tpu.core_type<tc>} {
    %c0 = arith.constant 0 : index
    %c0_0 = arith.constant 0 : index
    %0 = vector.load %arg0[%c0, %c0_0] : memref<16x32xf32, #tpu.memory_space<vmem>>, vector<16x32xf32>
    %c0_1 = arith.constant 0 : index
    %c0_2 = arith.constant 0 : index
    %1 = vector.load %arg11[%c0_1, %c0_2] : memref<16x32xf32, #tpu.memory_space<vmem>>, vector<16x32xf32>
    tpu.vector_store %arg11[%c0_1, %c0_2], %0 {strides = array<i32>} : memref<16x32xf32, #tpu.memory_space<vmem>>, vector<16x32xf32>,
    %c0_3 = arith.constant 0 : index
    %c0_4 = arith.constant 0 : index
    %2 = vector.load %arg11[%c0_3, %c0_4] : memref<16x32xf32, #tpu.memory_space<vmem>>, vector<16x32xf32>
    %c0_5 = arith.constant 0 : index
    %c0_6 = arith.constant 0 : index
    %c0_7 = arith.constant 0 : index
    %3 = vector.load %arg3[%c0_5, %c0_6, %c0_7] : memref<2x32x128xf32, #tpu.memory_space<vmem>>, vector<1x32x128xf32>
    %4 = vector.shape_cast %3 : vector<1x32x128xf32> to vector<32x128xf32>
    %cst = arith.constant dense<0.000000e+00> : vector<16x128xf32>
    %5 = tpu.matmul %2, %4, %cst {dimension_numbers = #tpu.dot_dimension_numbers<[1], [0], [0], [1], [0, 0, 1, 1], [], []>} : vector<16x32xf32>, vector<32x128xf32>, vector<16x128xf32> -> vector<16x128xf32>
    %c0_8 = arith.constant 0 : index
    %c0_9 = arith.constant 0 : index
    %c0_10 = arith.constant 0 : index
    %6 = vector.load %arg5[%c0_8, %c0_9, %c0_10] : memref<2x1x128xf32, #tpu.memory_space<vmem>>, vector<1x1x128xf32>
    %7 = vector.shape_cast %6 : vector<1x1x128xf32> to vector<1x128xf32>
    %8 = vector.broadcast %7 : vector<1x128xf32> to vector<16x128xf32>
    %9 = arith.addf %5, %8 : vector<16x128xf32>
    %c0_11 = arith.constant 0 : index
    %c0_12 = arith.constant 0 : index
    %c0_13 = arith.constant 0 : index
    %10 = vector.load %arg1[%c0_11, %c0_12, %c0_13] : memref<2x2x32xf32, #tpu.memory_space<vmem>>, vector<1x2x32xf32>
    %11 = vector.shape_cast %10 : vector<1x2x32xf32> to vector<2x32xf32>
    %c0_14 = arith.constant 0 : index
    %c0_15 = arith.constant 0 : index
    %c0_16 = arith.constant 0 : index
    %12 = vector.load %arg2[%c0_14, %c0_15, %c0_16] : memref<2x2x32xf32, #tpu.memory_space<vmem>>, vector<1x2x32xf32>
    %13 = vector.shape_cast %12 : vector<1x2x32xf32> to vector<2x32xf32>
    %c0_17 = arith.constant 0 : index
    %c0_18 = arith.constant 0 : index
    %c0_19 = arith.constant 0 : index
    %14 = vector.load %arg4[%c0_17, %c0_18, %c0_19] : memref<2x32x128xf32, #tpu.memory_space<vmem>>, vector<1x32x128xf32>
    %15 = vector.shape_cast %14 : vector<1x32x128xf32> to vector<32x128xf32>
    %16 = vector.extract_strided_slice %9 {offsets = [0, 0], sizes = [2, 128], strides = [1, 1]} : vector<16x128xf32> to vector<2x128xf32>
    %cst_20 = arith.constant dense<0.000000e+00> : vector<2x128xf32>
    %17 = tpu.matmul %11, %15, %cst_20 {dimension_numbers = #tpu.dot_dimension_numbers<[1], [0], [0], [1], [0, 0, 1, 1], [], []>} : vector<2x32xf32>, vector<32x128xf32>, vector<2x128xf32> -> vector<2x128xf32>
    %18 = arith.addf %16, %17 : vector<2x128xf32>
    %19 = vector.extract_strided_slice %18 {offsets = [0, 0], sizes = [2, 32], strides = [1, 1]} : vector<2x128xf32> to vector<2x32xf32>
    %cst_21 = arith.constant 0.000000e+00 : f32
    %20 = vector.broadcast %cst_21 : f32 to vector<2x32xf32>
    %21 = arith.subf %20, %19 : vector<2x32xf32>
    %22 = math.exp %21 : vector<2x32xf32>
    %cst_22 = arith.constant 1.000000e+00 : f32
    %23 = vector.broadcast %cst_22 : f32 to vector<2x32xf32>
    %24 = arith.addf %23, %22 : vector<2x32xf32>
    %cst_23 = arith.constant 1.000000e+00 : f32
    %25 = vector.broadcast %cst_23 : f32 to vector<2x32xf32>
    %26 = arith.divf %25, %24 : vector<2x32xf32>
    %27 = vector.extract_strided_slice %18 {offsets = [0, 32], sizes = [2, 32], strides = [1, 1]} : vector<2x128xf32> to vector<2x32xf32>
    %cst_24 = arith.constant 0.000000e+00 : f32
    %28 = vector.broadcast %cst_24 : f32 to vector<2x32xf32>
    %29 = arith.subf %28, %27 : vector<2x32xf32>
    %30 = math.exp %29 : vector<2x32xf32>
    %cst_25 = arith.constant 1.000000e+00 : f32
    %31 = vector.broadcast %cst_25 : f32 to vector<2x32xf32>
    %32 = arith.addf %31, %30 : vector<2x32xf32>
    %cst_26 = arith.constant 1.000000e+00 : f32
    %33 = vector.broadcast %cst_26 : f32 to vector<2x32xf32>
    %34 = arith.divf %33, %32 : vector<2x32xf32>
    %35 = vector.extract_strided_slice %18 {offsets = [0, 64], sizes = [2, 32], strides = [1, 1]} : vector<2x128xf32> to vector<2x32xf32>
    %36 = math.tanh %35 : vector<2x32xf32>
    %37 = vector.extract_strided_slice %18 {offsets = [0, 96], sizes = [2, 32], strides = [1, 1]} : vector<2x128xf32> to vector<2x32xf32>
    %cst_27 = arith.constant 0.000000e+00 : f32
    %38 = vector.broadcast %cst_27 : f32 to vector<2x32xf32>
    %39 = arith.subf %38, %37 : vector<2x32xf32>
    %40 = math.exp %39 : vector<2x32xf32>
    %cst_28 = arith.constant 1.000000e+00 : f32
    %41 = vector.broadcast %cst_28 : f32 to vector<2x32xf32>
    %42 = arith.addf %41, %40 : vector<2x32xf32>
    %cst_29 = arith.constant 1.000000e+00 : f32
    %43 = vector.broadcast %cst_29 : f32 to vector<2x32xf32>
    %44 = arith.divf %43, %42 : vector<2x32xf32>
    %45 = arith.mulf %34, %13 : vector<2x32xf32>
    %46 = arith.mulf %26, %36 : vector<2x32xf32>
    %47 = arith.addf %45, %46 : vector<2x32xf32>
    %48 = math.tanh %47 : vector<2x32xf32>
    %49 = arith.mulf %44, %48 : vector<2x32xf32>
    %c0_30 = arith.constant 0 : index
    %c0_31 = arith.constant 0 : index
    %50 = vector.load %arg11[%c0_30, %c0_31] : memref<16x32xf32, #tpu.memory_space<vmem>>, vector<2x32xf32>
    tpu.vector_store %arg11[%c0_30, %c0_31], %49 {strides = array<i32>} : memref<16x32xf32, #tpu.memory_space<vmem>>, vector<2x32xf32>,
    %51 = vector.extract_strided_slice %9 {offsets = [2, 0], sizes = [2, 128], strides = [1, 1]} : vector<16x128xf32> to vector<2x128xf32>
    %cst_32 = arith.constant dense<0.000000e+00> : vector<2x128xf32>
    %52 = tpu.matmul %49, %15, %cst_32 {dimension_numbers = #tpu.dot_dimension_numbers<[1], [0], [0], [1], [0, 0, 1, 1], [], []>} : vector<2x32xf32>, vector<32x128xf32>, vector<2x128xf32> -> vector<2x128xf32>
    %53 = arith.addf %51, %52 : vector<2x128xf32>
    %54 = vector.extract_strided_slice %53 {offsets = [0, 0], sizes = [2, 32], strides = [1, 1]} : vector<2x128xf32> to vector<2x32xf32>
    %cst_33 = arith.constant 0.000000e+00 : f32
    %55 = vector.broadcast %cst_33 : f32 to vector<2x32xf32>
    %56 = arith.subf %55, %54 : vector<2x32xf32>
    %57 = math.exp %56 : vector<2x32xf32>
    %cst_34 = arith.constant 1.000000e+00 : f32
    %58 = vector.broadcast %cst_34 : f32 to vector<2x32xf32>
    %59 = arith.addf %58, %57 : vector<2x32xf32>
    %cst_35 = arith.constant 1.000000e+00 : f32
    %60 = vector.broadcast %cst_35 : f32 to vector<2x32xf32>
    %61 = arith.divf %60, %59 : vector<2x32xf32>
    %62 = vector.extract_strided_slice %53 {offsets = [0, 32], sizes = [2, 32], strides = [1, 1]} : vector<2x128xf32> to vector<2x32xf32>
    %cst_36 = arith.constant 0.000000e+00 : f32
    %63 = vector.broadcast %cst_36 : f32 to vector<2x32xf32>
    %64 = arith.subf %63, %62 : vector<2x32xf32>
    %65 = math.exp %64 : vector<2x32xf32>
    %cst_37 = arith.constant 1.000000e+00 : f32
    %66 = vector.broadcast %cst_37 : f32 to vector<2x32xf32>
    %67 = arith.addf %66, %65 : vector<2x32xf32>
    %cst_38 = arith.constant 1.000000e+00 : f32
    %68 = vector.broadcast %cst_38 : f32 to vector<2x32xf32>
    %69 = arith.divf %68, %67 : vector<2x32xf32>
    %70 = vector.extract_strided_slice %53 {offsets = [0, 64], sizes = [2, 32], strides = [1, 1]} : vector<2x128xf32> to vector<2x32xf32>
    %71 = math.tanh %70 : vector<2x32xf32>
    %72 = vector.extract_strided_slice %53 {offsets = [0, 96], sizes = [2, 32], strides = [1, 1]} : vector<2x128xf32> to vector<2x32xf32>
    %cst_39 = arith.constant 0.000000e+00 : f32
    %73 = vector.broadcast %cst_39 : f32 to vector<2x32xf32>
    %74 = arith.subf %73, %72 : vector<2x32xf32>
    %75 = math.exp %74 : vector<2x32xf32>
    %cst_40 = arith.constant 1.000000e+00 : f32
    %76 = vector.broadcast %cst_40 : f32 to vector<2x32xf32>
    %77 = arith.addf %76, %75 : vector<2x32xf32>
    %cst_41 = arith.constant 1.000000e+00 : f32
    %78 = vector.broadcast %cst_41 : f32 to vector<2x32xf32>
    %79 = arith.divf %78, %77 : vector<2x32xf32>
    %80 = arith.mulf %69, %47 : vector<2x32xf32>
    %81 = arith.mulf %61, %71 : vector<2x32xf32>
    %82 = arith.addf %80, %81 : vector<2x32xf32>
    %83 = math.tanh %82 : vector<2x32xf32>
    %84 = arith.mulf %79, %83 : vector<2x32xf32>
    %c2 = arith.constant 2 : index
    %c0_42 = arith.constant 0 : index
    %85 = vector.load %arg11[%c2, %c0_42] : memref<16x32xf32, #tpu.memory_space<vmem>>, vector<2x32xf32>
    tpu.vector_store %arg11[%c2, %c0_42], %84 {strides = array<i32>} : memref<16x32xf32, #tpu.memory_space<vmem>>, vector<2x32xf32>,
    %86 = vector.extract_strided_slice %9 {offsets = [4, 0], sizes = [2, 128], strides = [1, 1]} : vector<16x128xf32> to vector<2x128xf32>
    %cst_43 = arith.constant dense<0.000000e+00> : vector<2x128xf32>
    %87 = tpu.matmul %84, %15, %cst_43 {dimension_numbers = #tpu.dot_dimension_numbers<[1], [0], [0], [1], [0, 0, 1, 1], [], []>} : vector<2x32xf32>, vector<32x128xf32>, vector<2x128xf32> -> vector<2x128xf32>
    %88 = arith.addf %86, %87 : vector<2x128xf32>
    %89 = vector.extract_strided_slice %88 {offsets = [0, 0], sizes = [2, 32], strides = [1, 1]} : vector<2x128xf32> to vector<2x32xf32>
    %cst_44 = arith.constant 0.000000e+00 : f32
    %90 = vector.broadcast %cst_44 : f32 to vector<2x32xf32>
    %91 = arith.subf %90, %89 : vector<2x32xf32>
    %92 = math.exp %91 : vector<2x32xf32>
    %cst_45 = arith.constant 1.000000e+00 : f32
    %93 = vector.broadcast %cst_45 : f32 to vector<2x32xf32>
    %94 = arith.addf %93, %92 : vector<2x32xf32>
    %cst_46 = arith.constant 1.000000e+00 : f32
    %95 = vector.broadcast %cst_46 : f32 to vector<2x32xf32>
    %96 = arith.divf %95, %94 : vector<2x32xf32>
    %97 = vector.extract_strided_slice %88 {offsets = [0, 32], sizes = [2, 32], strides = [1, 1]} : vector<2x128xf32> to vector<2x32xf32>
    %cst_47 = arith.constant 0.000000e+00 : f32
    %98 = vector.broadcast %cst_47 : f32 to vector<2x32xf32>
    %99 = arith.subf %98, %97 : vector<2x32xf32>
    %100 = math.exp %99 : vector<2x32xf32>
    %cst_48 = arith.constant 1.000000e+00 : f32
    %101 = vector.broadcast %cst_48 : f32 to vector<2x32xf32>
    %102 = arith.addf %101, %100 : vector<2x32xf32>
    %cst_49 = arith.constant 1.000000e+00 : f32
    %103 = vector.broadcast %cst_49 : f32 to vector<2x32xf32>
    %104 = arith.divf %103, %102 : vector<2x32xf32>
    %105 = vector.extract_strided_slice %88 {offsets = [0, 64], sizes = [2, 32], strides = [1, 1]} : vector<2x128xf32> to vector<2x32xf32>
    %106 = math.tanh %105 : vector<2x32xf32>
    %107 = vector.extract_strided_slice %88 {offsets = [0, 96], sizes = [2, 32], strides = [1, 1]} : vector<2x128xf32> to vector<2x32xf32>
    %cst_50 = arith.constant 0.000000e+00 : f32
    %108 = vector.broadcast %cst_50 : f32 to vector<2x32xf32>
    %109 = arith.subf %108, %107 : vector<2x32xf32>
    %110 = math.exp %109 : vector<2x32xf32>
    %cst_51 = arith.constant 1.000000e+00 : f32
    %111 = vector.broadcast %cst_51 : f32 to vector<2x32xf32>
    %112 = arith.addf %111, %110 : vector<2x32xf32>
    %cst_52 = arith.constant 1.000000e+00 : f32
    %113 = vector.broadcast %cst_52 : f32 to vector<2x32xf32>
    %114 = arith.divf %113, %112 : vector<2x32xf32>
    %115 = arith.mulf %104, %82 : vector<2x32xf32>
    %116 = arith.mulf %96, %106 : vector<2x32xf32>
    %117 = arith.addf %115, %116 : vector<2x32xf32>
    %118 = math.tanh %117 : vector<2x32xf32>
    %119 = arith.mulf %114, %118 : vector<2x32xf32>
    %c4 = arith.constant 4 : index
    %c0_53 = arith.constant 0 : index
    %120 = vector.load %arg11[%c4, %c0_53] : memref<16x32xf32, #tpu.memory_space<vmem>>, vector<2x32xf32>
    tpu.vector_store %arg11[%c4, %c0_53], %119 {strides = array<i32>} : memref<16x32xf32, #tpu.memory_space<vmem>>, vector<2x32xf32>,
    %121 = vector.extract_strided_slice %9 {offsets = [6, 0], sizes = [2, 128], strides = [1, 1]} : vector<16x128xf32> to vector<2x128xf32>
    %cst_54 = arith.constant dense<0.000000e+00> : vector<2x128xf32>
    %122 = tpu.matmul %119, %15, %cst_54 {dimension_numbers = #tpu.dot_dimension_numbers<[1], [0], [0], [1], [0, 0, 1, 1], [], []>} : vector<2x32xf32>, vector<32x128xf32>, vector<2x128xf32> -> vector<2x128xf32>
    %123 = arith.addf %121, %122 : vector<2x128xf32>
    %124 = vector.extract_strided_slice %123 {offsets = [0, 0], sizes = [2, 32], strides = [1, 1]} : vector<2x128xf32> to vector<2x32xf32>
    %cst_55 = arith.constant 0.000000e+00 : f32
    %125 = vector.broadcast %cst_55 : f32 to vector<2x32xf32>
    %126 = arith.subf %125, %124 : vector<2x32xf32>
    %127 = math.exp %126 : vector<2x32xf32>
    %cst_56 = arith.constant 1.000000e+00 : f32
    %128 = vector.broadcast %cst_56 : f32 to vector<2x32xf32>
    %129 = arith.addf %128, %127 : vector<2x32xf32>
    %cst_57 = arith.constant 1.000000e+00 : f32
    %130 = vector.broadcast %cst_57 : f32 to vector<2x32xf32>
    %131 = arith.divf %130, %129 : vector<2x32xf32>
    %132 = vector.extract_strided_slice %123 {offsets = [0, 32], sizes = [2, 32], strides = [1, 1]} : vector<2x128xf32> to vector<2x32xf32>
    %cst_58 = arith.constant 0.000000e+00 : f32
    %133 = vector.broadcast %cst_58 : f32 to vector<2x32xf32>
    %134 = arith.subf %133, %132 : vector<2x32xf32>
    %135 = math.exp %134 : vector<2x32xf32>
    %cst_59 = arith.constant 1.000000e+00 : f32
    %136 = vector.broadcast %cst_59 : f32 to vector<2x32xf32>
    %137 = arith.addf %136, %135 : vector<2x32xf32>
    %cst_60 = arith.constant 1.000000e+00 : f32
    %138 = vector.broadcast %cst_60 : f32 to vector<2x32xf32>
    %139 = arith.divf %138, %137 : vector<2x32xf32>
    %140 = vector.extract_strided_slice %123 {offsets = [0, 64], sizes = [2, 32], strides = [1, 1]} : vector<2x128xf32> to vector<2x32xf32>
    %141 = math.tanh %140 : vector<2x32xf32>
    %142 = vector.extract_strided_slice %123 {offsets = [0, 96], sizes = [2, 32], strides = [1, 1]} : vector<2x128xf32> to vector<2x32xf32>
    %cst_61 = arith.constant 0.000000e+00 : f32
    %143 = vector.broadcast %cst_61 : f32 to vector<2x32xf32>
    %144 = arith.subf %143, %142 : vector<2x32xf32>
    %145 = math.exp %144 : vector<2x32xf32>
    %cst_62 = arith.constant 1.000000e+00 : f32
    %146 = vector.broadcast %cst_62 : f32 to vector<2x32xf32>
    %147 = arith.addf %146, %145 : vector<2x32xf32>
    %cst_63 = arith.constant 1.000000e+00 : f32
    %148 = vector.broadcast %cst_63 : f32 to vector<2x32xf32>
    %149 = arith.divf %148, %147 : vector<2x32xf32>
    %150 = arith.mulf %139, %117 : vector<2x32xf32>
    %151 = arith.mulf %131, %141 : vector<2x32xf32>
    %152 = arith.addf %150, %151 : vector<2x32xf32>
    %153 = math.tanh %152 : vector<2x32xf32>
    %154 = arith.mulf %149, %153 : vector<2x32xf32>
    %c6 = arith.constant 6 : index
    %c0_64 = arith.constant 0 : index
    %155 = vector.load %arg11[%c6, %c0_64] : memref<16x32xf32, #tpu.memory_space<vmem>>, vector<2x32xf32>
    tpu.vector_store %arg11[%c6, %c0_64], %154 {strides = array<i32>} : memref<16x32xf32, #tpu.memory_space<vmem>>, vector<2x32xf32>,
    %156 = vector.extract_strided_slice %9 {offsets = [8, 0], sizes = [2, 128], strides = [1, 1]} : vector<16x128xf32> to vector<2x128xf32>
    %cst_65 = arith.constant dense<0.000000e+00> : vector<2x128xf32>
    %157 = tpu.matmul %154, %15, %cst_65 {dimension_numbers = #tpu.dot_dimension_numbers<[1], [0], [0], [1], [0, 0, 1, 1], [], []>} : vector<2x32xf32>, vector<32x128xf32>, vector<2x128xf32> -> vector<2x128xf32>
    %158 = arith.addf %156, %157 : vector<2x128xf32>
    %159 = vector.extract_strided_slice %158 {offsets = [0, 0], sizes = [2, 32], strides = [1, 1]} : vector<2x128xf32> to vector<2x32xf32>
    %cst_66 = arith.constant 0.000000e+00 : f32
    %160 = vector.broadcast %cst_66 : f32 to vector<2x32xf32>
    %161 = arith.subf %160, %159 : vector<2x32xf32>
    %162 = math.exp %161 : vector<2x32xf32>
    %cst_67 = arith.constant 1.000000e+00 : f32
    %163 = vector.broadcast %cst_67 : f32 to vector<2x32xf32>
    %164 = arith.addf %163, %162 : vector<2x32xf32>
    %cst_68 = arith.constant 1.000000e+00 : f32
    %165 = vector.broadcast %cst_68 : f32 to vector<2x32xf32>
    %166 = arith.divf %165, %164 : vector<2x32xf32>
    %167 = vector.extract_strided_slice %158 {offsets = [0, 32], sizes = [2, 32], strides = [1, 1]} : vector<2x128xf32> to vector<2x32xf32>
    %cst_69 = arith.constant 0.000000e+00 : f32
    %168 = vector.broadcast %cst_69 : f32 to vector<2x32xf32>
    %169 = arith.subf %168, %167 : vector<2x32xf32>
    %170 = math.exp %169 : vector<2x32xf32>
    %cst_70 = arith.constant 1.000000e+00 : f32
    %171 = vector.broadcast %cst_70 : f32 to vector<2x32xf32>
    %172 = arith.addf %171, %170 : vector<2x32xf32>
    %cst_71 = arith.constant 1.000000e+00 : f32
    %173 = vector.broadcast %cst_71 : f32 to vector<2x32xf32>
    %174 = arith.divf %173, %172 : vector<2x32xf32>
    %175 = vector.extract_strided_slice %158 {offsets = [0, 64], sizes = [2, 32], strides = [1, 1]} : vector<2x128xf32> to vector<2x32xf32>
    %176 = math.tanh %175 : vector<2x32xf32>
    %177 = vector.extract_strided_slice %158 {offsets = [0, 96], sizes = [2, 32], strides = [1, 1]} : vector<2x128xf32> to vector<2x32xf32>
    %cst_72 = arith.constant 0.000000e+00 : f32
    %178 = vector.broadcast %cst_72 : f32 to vector<2x32xf32>
    %179 = arith.subf %178, %177 : vector<2x32xf32>
    %180 = math.exp %179 : vector<2x32xf32>
    %cst_73 = arith.constant 1.000000e+00 : f32
    %181 = vector.broadcast %cst_73 : f32 to vector<2x32xf32>
    %182 = arith.addf %181, %180 : vector<2x32xf32>
    %cst_74 = arith.constant 1.000000e+00 : f32
    %183 = vector.broadcast %cst_74 : f32 to vector<2x32xf32>
    %184 = arith.divf %183, %182 : vector<2x32xf32>
    %185 = arith.mulf %174, %152 : vector<2x32xf32>
    %186 = arith.mulf %166, %176 : vector<2x32xf32>
    %187 = arith.addf %185, %186 : vector<2x32xf32>
    %188 = math.tanh %187 : vector<2x32xf32>
    %189 = arith.mulf %184, %188 : vector<2x32xf32>
    %c8 = arith.constant 8 : index
    %c0_75 = arith.constant 0 : index
    %190 = vector.load %arg11[%c8, %c0_75] : memref<16x32xf32, #tpu.memory_space<vmem>>, vector<2x32xf32>
    tpu.vector_store %arg11[%c8, %c0_75], %189 {strides = array<i32>} : memref<16x32xf32, #tpu.memory_space<vmem>>, vector<2x32xf32>,
    %191 = vector.extract_strided_slice %9 {offsets = [10, 0], sizes = [2, 128], strides = [1, 1]} : vector<16x128xf32> to vector<2x128xf32>
    %cst_76 = arith.constant dense<0.000000e+00> : vector<2x128xf32>
    %192 = tpu.matmul %189, %15, %cst_76 {dimension_numbers = #tpu.dot_dimension_numbers<[1], [0], [0], [1], [0, 0, 1, 1], [], []>} : vector<2x32xf32>, vector<32x128xf32>, vector<2x128xf32> -> vector<2x128xf32>
    %193 = arith.addf %191, %192 : vector<2x128xf32>
    %194 = vector.extract_strided_slice %193 {offsets = [0, 0], sizes = [2, 32], strides = [1, 1]} : vector<2x128xf32> to vector<2x32xf32>
    %cst_77 = arith.constant 0.000000e+00 : f32
    %195 = vector.broadcast %cst_77 : f32 to vector<2x32xf32>
    %196 = arith.subf %195, %194 : vector<2x32xf32>
    %197 = math.exp %196 : vector<2x32xf32>
    %cst_78 = arith.constant 1.000000e+00 : f32
    %198 = vector.broadcast %cst_78 : f32 to vector<2x32xf32>
    %199 = arith.addf %198, %197 : vector<2x32xf32>
    %cst_79 = arith.constant 1.000000e+00 : f32
    %200 = vector.broadcast %cst_79 : f32 to vector<2x32xf32>
    %201 = arith.divf %200, %199 : vector<2x32xf32>
    %202 = vector.extract_strided_slice %193 {offsets = [0, 32], sizes = [2, 32], strides = [1, 1]} : vector<2x128xf32> to vector<2x32xf32>
    %cst_80 = arith.constant 0.000000e+00 : f32
    %203 = vector.broadcast %cst_80 : f32 to vector<2x32xf32>
    %204 = arith.subf %203, %202 : vector<2x32xf32>
    %205 = math.exp %204 : vector<2x32xf32>
    %cst_81 = arith.constant 1.000000e+00 : f32
    %206 = vector.broadcast %cst_81 : f32 to vector<2x32xf32>
    %207 = arith.addf %206, %205 : vector<2x32xf32>
    %cst_82 = arith.constant 1.000000e+00 : f32
    %208 = vector.broadcast %cst_82 : f32 to vector<2x32xf32>
    %209 = arith.divf %208, %207 : vector<2x32xf32>
    %210 = vector.extract_strided_slice %193 {offsets = [0, 64], sizes = [2, 32], strides = [1, 1]} : vector<2x128xf32> to vector<2x32xf32>
    %211 = math.tanh %210 : vector<2x32xf32>
    %212 = vector.extract_strided_slice %193 {offsets = [0, 96], sizes = [2, 32], strides = [1, 1]} : vector<2x128xf32> to vector<2x32xf32>
    %cst_83 = arith.constant 0.000000e+00 : f32
    %213 = vector.broadcast %cst_83 : f32 to vector<2x32xf32>
    %214 = arith.subf %213, %212 : vector<2x32xf32>
    %215 = math.exp %214 : vector<2x32xf32>
    %cst_84 = arith.constant 1.000000e+00 : f32
    %216 = vector.broadcast %cst_84 : f32 to vector<2x32xf32>
    %217 = arith.addf %216, %215 : vector<2x32xf32>
    %cst_85 = arith.constant 1.000000e+00 : f32
    %218 = vector.broadcast %cst_85 : f32 to vector<2x32xf32>
    %219 = arith.divf %218, %217 : vector<2x32xf32>
    %220 = arith.mulf %209, %187 : vector<2x32xf32>
    %221 = arith.mulf %201, %211 : vector<2x32xf32>
    %222 = arith.addf %220, %221 : vector<2x32xf32>
    %223 = math.tanh %222 : vector<2x32xf32>
    %224 = arith.mulf %219, %223 : vector<2x32xf32>
    %c10 = arith.constant 10 : index
    %c0_86 = arith.constant 0 : index
    %225 = vector.load %arg11[%c10, %c0_86] : memref<16x32xf32, #tpu.memory_space<vmem>>, vector<2x32xf32>
    tpu.vector_store %arg11[%c10, %c0_86], %224 {strides = array<i32>} : memref<16x32xf32, #tpu.memory_space<vmem>>, vector<2x32xf32>,
    %226 = vector.extract_strided_slice %9 {offsets = [12, 0], sizes = [2, 128], strides = [1, 1]} : vector<16x128xf32> to vector<2x128xf32>
    %cst_87 = arith.constant dense<0.000000e+00> : vector<2x128xf32>
    %227 = tpu.matmul %224, %15, %cst_87 {dimension_numbers = #tpu.dot_dimension_numbers<[1], [0], [0], [1], [0, 0, 1, 1], [], []>} : vector<2x32xf32>, vector<32x128xf32>, vector<2x128xf32> -> vector<2x128xf32>
    %228 = arith.addf %226, %227 : vector<2x128xf32>
    %229 = vector.extract_strided_slice %228 {offsets = [0, 0], sizes = [2, 32], strides = [1, 1]} : vector<2x128xf32> to vector<2x32xf32>
    %cst_88 = arith.constant 0.000000e+00 : f32
    %230 = vector.broadcast %cst_88 : f32 to vector<2x32xf32>
    %231 = arith.subf %230, %229 : vector<2x32xf32>
    %232 = math.exp %231 : vector<2x32xf32>
    %cst_89 = arith.constant 1.000000e+00 : f32
    %233 = vector.broadcast %cst_89 : f32 to vector<2x32xf32>
    %234 = arith.addf %233, %232 : vector<2x32xf32>
    %cst_90 = arith.constant 1.000000e+00 : f32
    %235 = vector.broadcast %cst_90 : f32 to vector<2x32xf32>
    %236 = arith.divf %235, %234 : vector<2x32xf32>
    %237 = vector.extract_strided_slice %228 {offsets = [0, 32], sizes = [2, 32], strides = [1, 1]} : vector<2x128xf32> to vector<2x32xf32>
    %cst_91 = arith.constant 0.000000e+00 : f32
    %238 = vector.broadcast %cst_91 : f32 to vector<2x32xf32>
    %239 = arith.subf %238, %237 : vector<2x32xf32>
    %240 = math.exp %239 : vector<2x32xf32>
    %cst_92 = arith.constant 1.000000e+00 : f32
    %241 = vector.broadcast %cst_92 : f32 to vector<2x32xf32>
    %242 = arith.addf %241, %240 : vector<2x32xf32>
    %cst_93 = arith.constant 1.000000e+00 : f32
    %243 = vector.broadcast %cst_93 : f32 to vector<2x32xf32>
    %244 = arith.divf %243, %242 : vector<2x32xf32>
    %245 = vector.extract_strided_slice %228 {offsets = [0, 64], sizes = [2, 32], strides = [1, 1]} : vector<2x128xf32> to vector<2x32xf32>
    %246 = math.tanh %245 : vector<2x32xf32>
    %247 = vector.extract_strided_slice %228 {offsets = [0, 96], sizes = [2, 32], strides = [1, 1]} : vector<2x128xf32> to vector<2x32xf32>
    %cst_94 = arith.constant 0.000000e+00 : f32
    %248 = vector.broadcast %cst_94 : f32 to vector<2x32xf32>
    %249 = arith.subf %248, %247 : vector<2x32xf32>
    %250 = math.exp %249 : vector<2x32xf32>
    %cst_95 = arith.constant 1.000000e+00 : f32
    %251 = vector.broadcast %cst_95 : f32 to vector<2x32xf32>
    %252 = arith.addf %251, %250 : vector<2x32xf32>
    %cst_96 = arith.constant 1.000000e+00 : f32
    %253 = vector.broadcast %cst_96 : f32 to vector<2x32xf32>
    %254 = arith.divf %253, %252 : vector<2x32xf32>
    %255 = arith.mulf %244, %222 : vector<2x32xf32>
    %256 = arith.mulf %236, %246 : vector<2x32xf32>
    %257 = arith.addf %255, %256 : vector<2x32xf32>
    %258 = math.tanh %257 : vector<2x32xf32>
    %259 = arith.mulf %254, %258 : vector<2x32xf32>
    %c12 = arith.constant 12 : index
    %c0_97 = arith.constant 0 : index
    %260 = vector.load %arg11[%c12, %c0_97] : memref<16x32xf32, #tpu.memory_space<vmem>>, vector<2x32xf32>
    tpu.vector_store %arg11[%c12, %c0_97], %259 {strides = array<i32>} : memref<16x32xf32, #tpu.memory_space<vmem>>, vector<2x32xf32>,
    %261 = vector.extract_strided_slice %9 {offsets = [14, 0], sizes = [2, 128], strides = [1, 1]} : vector<16x128xf32> to vector<2x128xf32>
    %cst_98 = arith.constant dense<0.000000e+00> : vector<2x128xf32>
    %262 = tpu.matmul %259, %15, %cst_98 {dimension_numbers = #tpu.dot_dimension_numbers<[1], [0], [0], [1], [0, 0, 1, 1], [], []>} : vector<2x32xf32>, vector<32x128xf32>, vector<2x128xf32> -> vector<2x128xf32>
    %263 = arith.addf %261, %262 : vector<2x128xf32>
    %264 = vector.extract_strided_slice %263 {offsets = [0, 0], sizes = [2, 32], strides = [1, 1]} : vector<2x128xf32> to vector<2x32xf32>
    %cst_99 = arith.constant 0.000000e+00 : f32
    %265 = vector.broadcast %cst_99 : f32 to vector<2x32xf32>
    %266 = arith.subf %265, %264 : vector<2x32xf32>
    %267 = math.exp %266 : vector<2x32xf32>
    %cst_100 = arith.constant 1.000000e+00 : f32
    %268 = vector.broadcast %cst_100 : f32 to vector<2x32xf32>
    %269 = arith.addf %268, %267 : vector<2x32xf32>
    %cst_101 = arith.constant 1.000000e+00 : f32
    %270 = vector.broadcast %cst_101 : f32 to vector<2x32xf32>
    %271 = arith.divf %270, %269 : vector<2x32xf32>
    %272 = vector.extract_strided_slice %263 {offsets = [0, 32], sizes = [2, 32], strides = [1, 1]} : vector<2x128xf32> to vector<2x32xf32>
    %cst_102 = arith.constant 0.000000e+00 : f32
    %273 = vector.broadcast %cst_102 : f32 to vector<2x32xf32>
    %274 = arith.subf %273, %272 : vector<2x32xf32>
    %275 = math.exp %274 : vector<2x32xf32>
    %cst_103 = arith.constant 1.000000e+00 : f32
    %276 = vector.broadcast %cst_103 : f32 to vector<2x32xf32>
    %277 = arith.addf %276, %275 : vector<2x32xf32>
    %cst_104 = arith.constant 1.000000e+00 : f32
    %278 = vector.broadcast %cst_104 : f32 to vector<2x32xf32>
    %279 = arith.divf %278, %277 : vector<2x32xf32>
    %280 = vector.extract_strided_slice %263 {offsets = [0, 64], sizes = [2, 32], strides = [1, 1]} : vector<2x128xf32> to vector<2x32xf32>
    %281 = math.tanh %280 : vector<2x32xf32>
    %282 = vector.extract_strided_slice %263 {offsets = [0, 96], sizes = [2, 32], strides = [1, 1]} : vector<2x128xf32> to vector<2x32xf32>
    %cst_105 = arith.constant 0.000000e+00 : f32
    %283 = vector.broadcast %cst_105 : f32 to vector<2x32xf32>
    %284 = arith.subf %283, %282 : vector<2x32xf32>
    %285 = math.exp %284 : vector<2x32xf32>
    %cst_106 = arith.constant 1.000000e+00 : f32
    %286 = vector.broadcast %cst_106 : f32 to vector<2x32xf32>
    %287 = arith.addf %286, %285 : vector<2x32xf32>
    %cst_107 = arith.constant 1.000000e+00 : f32
    %288 = vector.broadcast %cst_107 : f32 to vector<2x32xf32>
    %289 = arith.divf %288, %287 : vector<2x32xf32>
    %290 = arith.mulf %279, %257 : vector<2x32xf32>
    %291 = arith.mulf %271, %281 : vector<2x32xf32>
    %292 = arith.addf %290, %291 : vector<2x32xf32>
    %293 = math.tanh %292 : vector<2x32xf32>
    %294 = arith.mulf %289, %293 : vector<2x32xf32>
    %c14 = arith.constant 14 : index
    %c0_108 = arith.constant 0 : index
    %295 = vector.load %arg11[%c14, %c0_108] : memref<16x32xf32, #tpu.memory_space<vmem>>, vector<2x32xf32>
    tpu.vector_store %arg11[%c14, %c0_108], %294 {strides = array<i32>} : memref<16x32xf32, #tpu.memory_space<vmem>>, vector<2x32xf32>,
    %c0_109 = arith.constant 0 : index
    %c0_110 = arith.constant 0 : index
    %c0_111 = arith.constant 0 : index
    %296 = vector.load %arg9[%c0_109, %c0_110, %c0_111] : memref<2x2x32xf32, #tpu.memory_space<vmem>>, vector<1x2x32xf32>
    %297 = vector.shape_cast %296 : vector<1x2x32xf32> to vector<2x32xf32>
    %298 = vector.shape_cast %294 : vector<2x32xf32> to vector<1x2x32xf32>
    tpu.vector_store %arg9[%c0_109, %c0_110, %c0_111], %298 {strides = array<i32>} : memref<2x2x32xf32, #tpu.memory_space<vmem>>, vector<1x2x32xf32>,
    %c0_112 = arith.constant 0 : index
    %c0_113 = arith.constant 0 : index
    %c0_114 = arith.constant 0 : index
    %299 = vector.load %arg10[%c0_112, %c0_113, %c0_114] : memref<2x2x32xf32, #tpu.memory_space<vmem>>, vector<1x2x32xf32>
    %300 = vector.shape_cast %299 : vector<1x2x32xf32> to vector<2x32xf32>
    %301 = vector.shape_cast %292 : vector<2x32xf32> to vector<1x2x32xf32>
    tpu.vector_store %arg10[%c0_112, %c0_113, %c0_114], %301 {strides = array<i32>} : memref<2x2x32xf32, #tpu.memory_space<vmem>>, vector<1x2x32xf32>,
    %c0_115 = arith.constant 0 : index
    %c0_116 = arith.constant 0 : index
    %302 = vector.load %arg11[%c0_115, %c0_116] : memref<16x32xf32, #tpu.memory_space<vmem>>, vector<16x32xf32>
    %c1 = arith.constant 1 : index
    %c0_117 = arith.constant 0 : index
    %c0_118 = arith.constant 0 : index
    %303 = vector.load %arg3[%c1, %c0_117, %c0_118] : memref<2x32x128xf32, #tpu.memory_space<vmem>>, vector<1x32x128xf32>
    %304 = vector.shape_cast %303 : vector<1x32x128xf32> to vector<32x128xf32>
    %cst_119 = arith.constant dense<0.000000e+00> : vector<16x128xf32>
    %305 = tpu.matmul %302, %304, %cst_119 {dimension_numbers = #tpu.dot_dimension_numbers<[1], [0], [0], [1], [0, 0, 1, 1], [], []>} : vector<16x32xf32>, vector<32x128xf32>, vector<16x128xf32> -> vector<16x128xf32>
    %c1_120 = arith.constant 1 : index
    %c0_121 = arith.constant 0 : index
    %c0_122 = arith.constant 0 : index
    %306 = vector.load %arg5[%c1_120, %c0_121, %c0_122] : memref<2x1x128xf32, #tpu.memory_space<vmem>>, vector<1x1x128xf32>
    %307 = vector.shape_cast %306 : vector<1x1x128xf32> to vector<1x128xf32>
    %308 = vector.broadcast %307 : vector<1x128xf32> to vector<16x128xf32>
    %309 = arith.addf %305, %308 : vector<16x128xf32>
    %c1_123 = arith.constant 1 : index
    %c0_124 = arith.constant 0 : index
    %c0_125 = arith.constant 0 : index
    %310 = vector.load %arg1[%c1_123, %c0_124, %c0_125] : memref<2x2x32xf32, #tpu.memory_space<vmem>>, vector<1x2x32xf32>
    %311 = vector.shape_cast %310 : vector<1x2x32xf32> to vector<2x32xf32>
    %c1_126 = arith.constant 1 : index
    %c0_127 = arith.constant 0 : index
    %c0_128 = arith.constant 0 : index
    %312 = vector.load %arg2[%c1_126, %c0_127, %c0_128] : memref<2x2x32xf32, #tpu.memory_space<vmem>>, vector<1x2x32xf32>
    %313 = vector.shape_cast %312 : vector<1x2x32xf32> to vector<2x32xf32>
    %c1_129 = arith.constant 1 : index
    %c0_130 = arith.constant 0 : index
    %c0_131 = arith.constant 0 : index
    %314 = vector.load %arg4[%c1_129, %c0_130, %c0_131] : memref<2x32x128xf32, #tpu.memory_space<vmem>>, vector<1x32x128xf32>
    %315 = vector.shape_cast %314 : vector<1x32x128xf32> to vector<32x128xf32>
    %316 = vector.extract_strided_slice %309 {offsets = [0, 0], sizes = [2, 128], strides = [1, 1]} : vector<16x128xf32> to vector<2x128xf32>
    %cst_132 = arith.constant dense<0.000000e+00> : vector<2x128xf32>
    %317 = tpu.matmul %311, %315, %cst_132 {dimension_numbers = #tpu.dot_dimension_numbers<[1], [0], [0], [1], [0, 0, 1, 1], [], []>} : vector<2x32xf32>, vector<32x128xf32>, vector<2x128xf32> -> vector<2x128xf32>
    %318 = arith.addf %316, %317 : vector<2x128xf32>
    %319 = vector.extract_strided_slice %318 {offsets = [0, 0], sizes = [2, 32], strides = [1, 1]} : vector<2x128xf32> to vector<2x32xf32>
    %cst_133 = arith.constant 0.000000e+00 : f32
    %320 = vector.broadcast %cst_133 : f32 to vector<2x32xf32>
    %321 = arith.subf %320, %319 : vector<2x32xf32>
    %322 = math.exp %321 : vector<2x32xf32>
    %cst_134 = arith.constant 1.000000e+00 : f32
    %323 = vector.broadcast %cst_134 : f32 to vector<2x32xf32>
    %324 = arith.addf %323, %322 : vector<2x32xf32>
    %cst_135 = arith.constant 1.000000e+00 : f32
    %325 = vector.broadcast %cst_135 : f32 to vector<2x32xf32>
    %326 = arith.divf %325, %324 : vector<2x32xf32>
    %327 = vector.extract_strided_slice %318 {offsets = [0, 32], sizes = [2, 32], strides = [1, 1]} : vector<2x128xf32> to vector<2x32xf32>
    %cst_136 = arith.constant 0.000000e+00 : f32
    %328 = vector.broadcast %cst_136 : f32 to vector<2x32xf32>
    %329 = arith.subf %328, %327 : vector<2x32xf32>
    %330 = math.exp %329 : vector<2x32xf32>
    %cst_137 = arith.constant 1.000000e+00 : f32
    %331 = vector.broadcast %cst_137 : f32 to vector<2x32xf32>
    %332 = arith.addf %331, %330 : vector<2x32xf32>
    %cst_138 = arith.constant 1.000000e+00 : f32
    %333 = vector.broadcast %cst_138 : f32 to vector<2x32xf32>
    %334 = arith.divf %333, %332 : vector<2x32xf32>
    %335 = vector.extract_strided_slice %318 {offsets = [0, 64], sizes = [2, 32], strides = [1, 1]} : vector<2x128xf32> to vector<2x32xf32>
    %336 = math.tanh %335 : vector<2x32xf32>
    %337 = vector.extract_strided_slice %318 {offsets = [0, 96], sizes = [2, 32], strides = [1, 1]} : vector<2x128xf32> to vector<2x32xf32>
    %cst_139 = arith.constant 0.000000e+00 : f32
    %338 = vector.broadcast %cst_139 : f32 to vector<2x32xf32>
    %339 = arith.subf %338, %337 : vector<2x32xf32>
    %340 = math.exp %339 : vector<2x32xf32>
    %cst_140 = arith.constant 1.000000e+00 : f32
    %341 = vector.broadcast %cst_140 : f32 to vector<2x32xf32>
    %342 = arith.addf %341, %340 : vector<2x32xf32>
    %cst_141 = arith.constant 1.000000e+00 : f32
    %343 = vector.broadcast %cst_141 : f32 to vector<2x32xf32>
    %344 = arith.divf %343, %342 : vector<2x32xf32>
    %345 = arith.mulf %334, %313 : vector<2x32xf32>
    %346 = arith.mulf %326, %336 : vector<2x32xf32>
    %347 = arith.addf %345, %346 : vector<2x32xf32>
    %348 = math.tanh %347 : vector<2x32xf32>
    %349 = arith.mulf %344, %348 : vector<2x32xf32>
    %c0_142 = arith.constant 0 : index
    %c0_143 = arith.constant 0 : index
    %350 = vector.load %arg11[%c0_142, %c0_143] : memref<16x32xf32, #tpu.memory_space<vmem>>, vector<2x32xf32>
    tpu.vector_store %arg11[%c0_142, %c0_143], %349 {strides = array<i32>} : memref<16x32xf32, #tpu.memory_space<vmem>>, vector<2x32xf32>,
    %351 = vector.extract_strided_slice %309 {offsets = [2, 0], sizes = [2, 128], strides = [1, 1]} : vector<16x128xf32> to vector<2x128xf32>
    %cst_144 = arith.constant dense<0.000000e+00> : vector<2x128xf32>
    %352 = tpu.matmul %349, %315, %cst_144 {dimension_numbers = #tpu.dot_dimension_numbers<[1], [0], [0], [1], [0, 0, 1, 1], [], []>} : vector<2x32xf32>, vector<32x128xf32>, vector<2x128xf32> -> vector<2x128xf32>
    %353 = arith.addf %351, %352 : vector<2x128xf32>
    %354 = vector.extract_strided_slice %353 {offsets = [0, 0], sizes = [2, 32], strides = [1, 1]} : vector<2x128xf32> to vector<2x32xf32>
    %cst_145 = arith.constant 0.000000e+00 : f32
    %355 = vector.broadcast %cst_145 : f32 to vector<2x32xf32>
    %356 = arith.subf %355, %354 : vector<2x32xf32>
    %357 = math.exp %356 : vector<2x32xf32>
    %cst_146 = arith.constant 1.000000e+00 : f32
    %358 = vector.broadcast %cst_146 : f32 to vector<2x32xf32>
    %359 = arith.addf %358, %357 : vector<2x32xf32>
    %cst_147 = arith.constant 1.000000e+00 : f32
    %360 = vector.broadcast %cst_147 : f32 to vector<2x32xf32>
    %361 = arith.divf %360, %359 : vector<2x32xf32>
    %362 = vector.extract_strided_slice %353 {offsets = [0, 32], sizes = [2, 32], strides = [1, 1]} : vector<2x128xf32> to vector<2x32xf32>
    %cst_148 = arith.constant 0.000000e+00 : f32
    %363 = vector.broadcast %cst_148 : f32 to vector<2x32xf32>
    %364 = arith.subf %363, %362 : vector<2x32xf32>
    %365 = math.exp %364 : vector<2x32xf32>
    %cst_149 = arith.constant 1.000000e+00 : f32
    %366 = vector.broadcast %cst_149 : f32 to vector<2x32xf32>
    %367 = arith.addf %366, %365 : vector<2x32xf32>
    %cst_150 = arith.constant 1.000000e+00 : f32
    %368 = vector.broadcast %cst_150 : f32 to vector<2x32xf32>
    %369 = arith.divf %368, %367 : vector<2x32xf32>
    %370 = vector.extract_strided_slice %353 {offsets = [0, 64], sizes = [2, 32], strides = [1, 1]} : vector<2x128xf32> to vector<2x32xf32>
    %371 = math.tanh %370 : vector<2x32xf32>
    %372 = vector.extract_strided_slice %353 {offsets = [0, 96], sizes = [2, 32], strides = [1, 1]} : vector<2x128xf32> to vector<2x32xf32>
    %cst_151 = arith.constant 0.000000e+00 : f32
    %373 = vector.broadcast %cst_151 : f32 to vector<2x32xf32>
    %374 = arith.subf %373, %372 : vector<2x32xf32>
    %375 = math.exp %374 : vector<2x32xf32>
    %cst_152 = arith.constant 1.000000e+00 : f32
    %376 = vector.broadcast %cst_152 : f32 to vector<2x32xf32>
    %377 = arith.addf %376, %375 : vector<2x32xf32>
    %cst_153 = arith.constant 1.000000e+00 : f32
    %378 = vector.broadcast %cst_153 : f32 to vector<2x32xf32>
    %379 = arith.divf %378, %377 : vector<2x32xf32>
    %380 = arith.mulf %369, %347 : vector<2x32xf32>
    %381 = arith.mulf %361, %371 : vector<2x32xf32>
    %382 = arith.addf %380, %381 : vector<2x32xf32>
    %383 = math.tanh %382 : vector<2x32xf32>
    %384 = arith.mulf %379, %383 : vector<2x32xf32>
    %c2_154 = arith.constant 2 : index
    %c0_155 = arith.constant 0 : index
    %385 = vector.load %arg11[%c2_154, %c0_155] : memref<16x32xf32, #tpu.memory_space<vmem>>, vector<2x32xf32>
    tpu.vector_store %arg11[%c2_154, %c0_155], %384 {strides = array<i32>} : memref<16x32xf32, #tpu.memory_space<vmem>>, vector<2x32xf32>,
    %386 = vector.extract_strided_slice %309 {offsets = [4, 0], sizes = [2, 128], strides = [1, 1]} : vector<16x128xf32> to vector<2x128xf32>
    %cst_156 = arith.constant dense<0.000000e+00> : vector<2x128xf32>
    %387 = tpu.matmul %384, %315, %cst_156 {dimension_numbers = #tpu.dot_dimension_numbers<[1], [0], [0], [1], [0, 0, 1, 1], [], []>} : vector<2x32xf32>, vector<32x128xf32>, vector<2x128xf32> -> vector<2x128xf32>
    %388 = arith.addf %386, %387 : vector<2x128xf32>
    %389 = vector.extract_strided_slice %388 {offsets = [0, 0], sizes = [2, 32], strides = [1, 1]} : vector<2x128xf32> to vector<2x32xf32>
    %cst_157 = arith.constant 0.000000e+00 : f32
    %390 = vector.broadcast %cst_157 : f32 to vector<2x32xf32>
    %391 = arith.subf %390, %389 : vector<2x32xf32>
    %392 = math.exp %391 : vector<2x32xf32>
    %cst_158 = arith.constant 1.000000e+00 : f32
    %393 = vector.broadcast %cst_158 : f32 to vector<2x32xf32>
    %394 = arith.addf %393, %392 : vector<2x32xf32>
    %cst_159 = arith.constant 1.000000e+00 : f32
    %395 = vector.broadcast %cst_159 : f32 to vector<2x32xf32>
    %396 = arith.divf %395, %394 : vector<2x32xf32>
    %397 = vector.extract_strided_slice %388 {offsets = [0, 32], sizes = [2, 32], strides = [1, 1]} : vector<2x128xf32> to vector<2x32xf32>
    %cst_160 = arith.constant 0.000000e+00 : f32
    %398 = vector.broadcast %cst_160 : f32 to vector<2x32xf32>
    %399 = arith.subf %398, %397 : vector<2x32xf32>
    %400 = math.exp %399 : vector<2x32xf32>
    %cst_161 = arith.constant 1.000000e+00 : f32
    %401 = vector.broadcast %cst_161 : f32 to vector<2x32xf32>
    %402 = arith.addf %401, %400 : vector<2x32xf32>
    %cst_162 = arith.constant 1.000000e+00 : f32
    %403 = vector.broadcast %cst_162 : f32 to vector<2x32xf32>
    %404 = arith.divf %403, %402 : vector<2x32xf32>
    %405 = vector.extract_strided_slice %388 {offsets = [0, 64], sizes = [2, 32], strides = [1, 1]} : vector<2x128xf32> to vector<2x32xf32>
    %406 = math.tanh %405 : vector<2x32xf32>
    %407 = vector.extract_strided_slice %388 {offsets = [0, 96], sizes = [2, 32], strides = [1, 1]} : vector<2x128xf32> to vector<2x32xf32>
    %cst_163 = arith.constant 0.000000e+00 : f32
    %408 = vector.broadcast %cst_163 : f32 to vector<2x32xf32>
    %409 = arith.subf %408, %407 : vector<2x32xf32>
    %410 = math.exp %409 : vector<2x32xf32>
    %cst_164 = arith.constant 1.000000e+00 : f32
    %411 = vector.broadcast %cst_164 : f32 to vector<2x32xf32>
    %412 = arith.addf %411, %410 : vector<2x32xf32>
    %cst_165 = arith.constant 1.000000e+00 : f32
    %413 = vector.broadcast %cst_165 : f32 to vector<2x32xf32>
    %414 = arith.divf %413, %412 : vector<2x32xf32>
    %415 = arith.mulf %404, %382 : vector<2x32xf32>
    %416 = arith.mulf %396, %406 : vector<2x32xf32>
    %417 = arith.addf %415, %416 : vector<2x32xf32>
    %418 = math.tanh %417 : vector<2x32xf32>
    %419 = arith.mulf %414, %418 : vector<2x32xf32>
    %c4_166 = arith.constant 4 : index
    %c0_167 = arith.constant 0 : index
    %420 = vector.load %arg11[%c4_166, %c0_167] : memref<16x32xf32, #tpu.memory_space<vmem>>, vector<2x32xf32>
    tpu.vector_store %arg11[%c4_166, %c0_167], %419 {strides = array<i32>} : memref<16x32xf32, #tpu.memory_space<vmem>>, vector<2x32xf32>,
    %421 = vector.extract_strided_slice %309 {offsets = [6, 0], sizes = [2, 128], strides = [1, 1]} : vector<16x128xf32> to vector<2x128xf32>
    %cst_168 = arith.constant dense<0.000000e+00> : vector<2x128xf32>
    %422 = tpu.matmul %419, %315, %cst_168 {dimension_numbers = #tpu.dot_dimension_numbers<[1], [0], [0], [1], [0, 0, 1, 1], [], []>} : vector<2x32xf32>, vector<32x128xf32>, vector<2x128xf32> -> vector<2x128xf32>
    %423 = arith.addf %421, %422 : vector<2x128xf32>
    %424 = vector.extract_strided_slice %423 {offsets = [0, 0], sizes = [2, 32], strides = [1, 1]} : vector<2x128xf32> to vector<2x32xf32>
    %cst_169 = arith.constant 0.000000e+00 : f32
    %425 = vector.broadcast %cst_169 : f32 to vector<2x32xf32>
    %426 = arith.subf %425, %424 : vector<2x32xf32>
    %427 = math.exp %426 : vector<2x32xf32>
    %cst_170 = arith.constant 1.000000e+00 : f32
    %428 = vector.broadcast %cst_170 : f32 to vector<2x32xf32>
    %429 = arith.addf %428, %427 : vector<2x32xf32>
    %cst_171 = arith.constant 1.000000e+00 : f32
    %430 = vector.broadcast %cst_171 : f32 to vector<2x32xf32>
    %431 = arith.divf %430, %429 : vector<2x32xf32>
    %432 = vector.extract_strided_slice %423 {offsets = [0, 32], sizes = [2, 32], strides = [1, 1]} : vector<2x128xf32> to vector<2x32xf32>
    %cst_172 = arith.constant 0.000000e+00 : f32
    %433 = vector.broadcast %cst_172 : f32 to vector<2x32xf32>
    %434 = arith.subf %433, %432 : vector<2x32xf32>
    %435 = math.exp %434 : vector<2x32xf32>
    %cst_173 = arith.constant 1.000000e+00 : f32
    %436 = vector.broadcast %cst_173 : f32 to vector<2x32xf32>
    %437 = arith.addf %436, %435 : vector<2x32xf32>
    %cst_174 = arith.constant 1.000000e+00 : f32
    %438 = vector.broadcast %cst_174 : f32 to vector<2x32xf32>
    %439 = arith.divf %438, %437 : vector<2x32xf32>
    %440 = vector.extract_strided_slice %423 {offsets = [0, 64], sizes = [2, 32], strides = [1, 1]} : vector<2x128xf32> to vector<2x32xf32>
    %441 = math.tanh %440 : vector<2x32xf32>
    %442 = vector.extract_strided_slice %423 {offsets = [0, 96], sizes = [2, 32], strides = [1, 1]} : vector<2x128xf32> to vector<2x32xf32>
    %cst_175 = arith.constant 0.000000e+00 : f32
    %443 = vector.broadcast %cst_175 : f32 to vector<2x32xf32>
    %444 = arith.subf %443, %442 : vector<2x32xf32>
    %445 = math.exp %444 : vector<2x32xf32>
    %cst_176 = arith.constant 1.000000e+00 : f32
    %446 = vector.broadcast %cst_176 : f32 to vector<2x32xf32>
    %447 = arith.addf %446, %445 : vector<2x32xf32>
    %cst_177 = arith.constant 1.000000e+00 : f32
    %448 = vector.broadcast %cst_177 : f32 to vector<2x32xf32>
    %449 = arith.divf %448, %447 : vector<2x32xf32>
    %450 = arith.mulf %439, %417 : vector<2x32xf32>
    %451 = arith.mulf %431, %441 : vector<2x32xf32>
    %452 = arith.addf %450, %451 : vector<2x32xf32>
    %453 = math.tanh %452 : vector<2x32xf32>
    %454 = arith.mulf %449, %453 : vector<2x32xf32>
    %c6_178 = arith.constant 6 : index
    %c0_179 = arith.constant 0 : index
    %455 = vector.load %arg11[%c6_178, %c0_179] : memref<16x32xf32, #tpu.memory_space<vmem>>, vector<2x32xf32>
    tpu.vector_store %arg11[%c6_178, %c0_179], %454 {strides = array<i32>} : memref<16x32xf32, #tpu.memory_space<vmem>>, vector<2x32xf32>,
    %456 = vector.extract_strided_slice %309 {offsets = [8, 0], sizes = [2, 128], strides = [1, 1]} : vector<16x128xf32> to vector<2x128xf32>
    %cst_180 = arith.constant dense<0.000000e+00> : vector<2x128xf32>
    %457 = tpu.matmul %454, %315, %cst_180 {dimension_numbers = #tpu.dot_dimension_numbers<[1], [0], [0], [1], [0, 0, 1, 1], [], []>} : vector<2x32xf32>, vector<32x128xf32>, vector<2x128xf32> -> vector<2x128xf32>
    %458 = arith.addf %456, %457 : vector<2x128xf32>
    %459 = vector.extract_strided_slice %458 {offsets = [0, 0], sizes = [2, 32], strides = [1, 1]} : vector<2x128xf32> to vector<2x32xf32>
    %cst_181 = arith.constant 0.000000e+00 : f32
    %460 = vector.broadcast %cst_181 : f32 to vector<2x32xf32>
    %461 = arith.subf %460, %459 : vector<2x32xf32>
    %462 = math.exp %461 : vector<2x32xf32>
    %cst_182 = arith.constant 1.000000e+00 : f32
    %463 = vector.broadcast %cst_182 : f32 to vector<2x32xf32>
    %464 = arith.addf %463, %462 : vector<2x32xf32>
    %cst_183 = arith.constant 1.000000e+00 : f32
    %465 = vector.broadcast %cst_183 : f32 to vector<2x32xf32>
    %466 = arith.divf %465, %464 : vector<2x32xf32>
    %467 = vector.extract_strided_slice %458 {offsets = [0, 32], sizes = [2, 32], strides = [1, 1]} : vector<2x128xf32> to vector<2x32xf32>
    %cst_184 = arith.constant 0.000000e+00 : f32
    %468 = vector.broadcast %cst_184 : f32 to vector<2x32xf32>
    %469 = arith.subf %468, %467 : vector<2x32xf32>
    %470 = math.exp %469 : vector<2x32xf32>
    %cst_185 = arith.constant 1.000000e+00 : f32
    %471 = vector.broadcast %cst_185 : f32 to vector<2x32xf32>
    %472 = arith.addf %471, %470 : vector<2x32xf32>
    %cst_186 = arith.constant 1.000000e+00 : f32
    %473 = vector.broadcast %cst_186 : f32 to vector<2x32xf32>
    %474 = arith.divf %473, %472 : vector<2x32xf32>
    %475 = vector.extract_strided_slice %458 {offsets = [0, 64], sizes = [2, 32], strides = [1, 1]} : vector<2x128xf32> to vector<2x32xf32>
    %476 = math.tanh %475 : vector<2x32xf32>
    %477 = vector.extract_strided_slice %458 {offsets = [0, 96], sizes = [2, 32], strides = [1, 1]} : vector<2x128xf32> to vector<2x32xf32>
    %cst_187 = arith.constant 0.000000e+00 : f32
    %478 = vector.broadcast %cst_187 : f32 to vector<2x32xf32>
    %479 = arith.subf %478, %477 : vector<2x32xf32>
    %480 = math.exp %479 : vector<2x32xf32>
    %cst_188 = arith.constant 1.000000e+00 : f32
    %481 = vector.broadcast %cst_188 : f32 to vector<2x32xf32>
    %482 = arith.addf %481, %480 : vector<2x32xf32>
    %cst_189 = arith.constant 1.000000e+00 : f32
    %483 = vector.broadcast %cst_189 : f32 to vector<2x32xf32>
    %484 = arith.divf %483, %482 : vector<2x32xf32>
    %485 = arith.mulf %474, %452 : vector<2x32xf32>
    %486 = arith.mulf %466, %476 : vector<2x32xf32>
    %487 = arith.addf %485, %486 : vector<2x32xf32>
    %488 = math.tanh %487 : vector<2x32xf32>
    %489 = arith.mulf %484, %488 : vector<2x32xf32>
    %c8_190 = arith.constant 8 : index
    %c0_191 = arith.constant 0 : index
    %490 = vector.load %arg11[%c8_190, %c0_191] : memref<16x32xf32, #tpu.memory_space<vmem>>, vector<2x32xf32>
    tpu.vector_store %arg11[%c8_190, %c0_191], %489 {strides = array<i32>} : memref<16x32xf32, #tpu.memory_space<vmem>>, vector<2x32xf32>,
    %491 = vector.extract_strided_slice %309 {offsets = [10, 0], sizes = [2, 128], strides = [1, 1]} : vector<16x128xf32> to vector<2x128xf32>
    %cst_192 = arith.constant dense<0.000000e+00> : vector<2x128xf32>
    %492 = tpu.matmul %489, %315, %cst_192 {dimension_numbers = #tpu.dot_dimension_numbers<[1], [0], [0], [1], [0, 0, 1, 1], [], []>} : vector<2x32xf32>, vector<32x128xf32>, vector<2x128xf32> -> vector<2x128xf32>
    %493 = arith.addf %491, %492 : vector<2x128xf32>
    %494 = vector.extract_strided_slice %493 {offsets = [0, 0], sizes = [2, 32], strides = [1, 1]} : vector<2x128xf32> to vector<2x32xf32>
    %cst_193 = arith.constant 0.000000e+00 : f32
    %495 = vector.broadcast %cst_193 : f32 to vector<2x32xf32>
    %496 = arith.subf %495, %494 : vector<2x32xf32>
    %497 = math.exp %496 : vector<2x32xf32>
    %cst_194 = arith.constant 1.000000e+00 : f32
    %498 = vector.broadcast %cst_194 : f32 to vector<2x32xf32>
    %499 = arith.addf %498, %497 : vector<2x32xf32>
    %cst_195 = arith.constant 1.000000e+00 : f32
    %500 = vector.broadcast %cst_195 : f32 to vector<2x32xf32>
    %501 = arith.divf %500, %499 : vector<2x32xf32>
    %502 = vector.extract_strided_slice %493 {offsets = [0, 32], sizes = [2, 32], strides = [1, 1]} : vector<2x128xf32> to vector<2x32xf32>
    %cst_196 = arith.constant 0.000000e+00 : f32
    %503 = vector.broadcast %cst_196 : f32 to vector<2x32xf32>
    %504 = arith.subf %503, %502 : vector<2x32xf32>
    %505 = math.exp %504 : vector<2x32xf32>
    %cst_197 = arith.constant 1.000000e+00 : f32
    %506 = vector.broadcast %cst_197 : f32 to vector<2x32xf32>
    %507 = arith.addf %506, %505 : vector<2x32xf32>
    %cst_198 = arith.constant 1.000000e+00 : f32
    %508 = vector.broadcast %cst_198 : f32 to vector<2x32xf32>
    %509 = arith.divf %508, %507 : vector<2x32xf32>
    %510 = vector.extract_strided_slice %493 {offsets = [0, 64], sizes = [2, 32], strides = [1, 1]} : vector<2x128xf32> to vector<2x32xf32>
    %511 = math.tanh %510 : vector<2x32xf32>
    %512 = vector.extract_strided_slice %493 {offsets = [0, 96], sizes = [2, 32], strides = [1, 1]} : vector<2x128xf32> to vector<2x32xf32>
    %cst_199 = arith.constant 0.000000e+00 : f32
    %513 = vector.broadcast %cst_199 : f32 to vector<2x32xf32>
    %514 = arith.subf %513, %512 : vector<2x32xf32>
    %515 = math.exp %514 : vector<2x32xf32>
    %cst_200 = arith.constant 1.000000e+00 : f32
    %516 = vector.broadcast %cst_200 : f32 to vector<2x32xf32>
    %517 = arith.addf %516, %515 : vector<2x32xf32>
    %cst_201 = arith.constant 1.000000e+00 : f32
    %518 = vector.broadcast %cst_201 : f32 to vector<2x32xf32>
    %519 = arith.divf %518, %517 : vector<2x32xf32>
    %520 = arith.mulf %509, %487 : vector<2x32xf32>
    %521 = arith.mulf %501, %511 : vector<2x32xf32>
    %522 = arith.addf %520, %521 : vector<2x32xf32>
    %523 = math.tanh %522 : vector<2x32xf32>
    %524 = arith.mulf %519, %523 : vector<2x32xf32>
    %c10_202 = arith.constant 10 : index
    %c0_203 = arith.constant 0 : index
    %525 = vector.load %arg11[%c10_202, %c0_203] : memref<16x32xf32, #tpu.memory_space<vmem>>, vector<2x32xf32>
    tpu.vector_store %arg11[%c10_202, %c0_203], %524 {strides = array<i32>} : memref<16x32xf32, #tpu.memory_space<vmem>>, vector<2x32xf32>,
    %526 = vector.extract_strided_slice %309 {offsets = [12, 0], sizes = [2, 128], strides = [1, 1]} : vector<16x128xf32> to vector<2x128xf32>
    %cst_204 = arith.constant dense<0.000000e+00> : vector<2x128xf32>
    %527 = tpu.matmul %524, %315, %cst_204 {dimension_numbers = #tpu.dot_dimension_numbers<[1], [0], [0], [1], [0, 0, 1, 1], [], []>} : vector<2x32xf32>, vector<32x128xf32>, vector<2x128xf32> -> vector<2x128xf32>
    %528 = arith.addf %526, %527 : vector<2x128xf32>
    %529 = vector.extract_strided_slice %528 {offsets = [0, 0], sizes = [2, 32], strides = [1, 1]} : vector<2x128xf32> to vector<2x32xf32>
    %cst_205 = arith.constant 0.000000e+00 : f32
    %530 = vector.broadcast %cst_205 : f32 to vector<2x32xf32>
    %531 = arith.subf %530, %529 : vector<2x32xf32>
    %532 = math.exp %531 : vector<2x32xf32>
    %cst_206 = arith.constant 1.000000e+00 : f32
    %533 = vector.broadcast %cst_206 : f32 to vector<2x32xf32>
    %534 = arith.addf %533, %532 : vector<2x32xf32>
    %cst_207 = arith.constant 1.000000e+00 : f32
    %535 = vector.broadcast %cst_207 : f32 to vector<2x32xf32>
    %536 = arith.divf %535, %534 : vector<2x32xf32>
    %537 = vector.extract_strided_slice %528 {offsets = [0, 32], sizes = [2, 32], strides = [1, 1]} : vector<2x128xf32> to vector<2x32xf32>
    %cst_208 = arith.constant 0.000000e+00 : f32
    %538 = vector.broadcast %cst_208 : f32 to vector<2x32xf32>
    %539 = arith.subf %538, %537 : vector<2x32xf32>
    %540 = math.exp %539 : vector<2x32xf32>
    %cst_209 = arith.constant 1.000000e+00 : f32
    %541 = vector.broadcast %cst_209 : f32 to vector<2x32xf32>
    %542 = arith.addf %541, %540 : vector<2x32xf32>
    %cst_210 = arith.constant 1.000000e+00 : f32
    %543 = vector.broadcast %cst_210 : f32 to vector<2x32xf32>
    %544 = arith.divf %543, %542 : vector<2x32xf32>
    %545 = vector.extract_strided_slice %528 {offsets = [0, 64], sizes = [2, 32], strides = [1, 1]} : vector<2x128xf32> to vector<2x32xf32>
    %546 = math.tanh %545 : vector<2x32xf32>
    %547 = vector.extract_strided_slice %528 {offsets = [0, 96], sizes = [2, 32], strides = [1, 1]} : vector<2x128xf32> to vector<2x32xf32>
    %cst_211 = arith.constant 0.000000e+00 : f32
    %548 = vector.broadcast %cst_211 : f32 to vector<2x32xf32>
    %549 = arith.subf %548, %547 : vector<2x32xf32>
    %550 = math.exp %549 : vector<2x32xf32>
    %cst_212 = arith.constant 1.000000e+00 : f32
    %551 = vector.broadcast %cst_212 : f32 to vector<2x32xf32>
    %552 = arith.addf %551, %550 : vector<2x32xf32>
    %cst_213 = arith.constant 1.000000e+00 : f32
    %553 = vector.broadcast %cst_213 : f32 to vector<2x32xf32>
    %554 = arith.divf %553, %552 : vector<2x32xf32>
    %555 = arith.mulf %544, %522 : vector<2x32xf32>
    %556 = arith.mulf %536, %546 : vector<2x32xf32>
    %557 = arith.addf %555, %556 : vector<2x32xf32>
    %558 = math.tanh %557 : vector<2x32xf32>
    %559 = arith.mulf %554, %558 : vector<2x32xf32>
    %c12_214 = arith.constant 12 : index
    %c0_215 = arith.constant 0 : index
    %560 = vector.load %arg11[%c12_214, %c0_215] : memref<16x32xf32, #tpu.memory_space<vmem>>, vector<2x32xf32>
    tpu.vector_store %arg11[%c12_214, %c0_215], %559 {strides = array<i32>} : memref<16x32xf32, #tpu.memory_space<vmem>>, vector<2x32xf32>,
    %561 = vector.extract_strided_slice %309 {offsets = [14, 0], sizes = [2, 128], strides = [1, 1]} : vector<16x128xf32> to vector<2x128xf32>
    %cst_216 = arith.constant dense<0.000000e+00> : vector<2x128xf32>
    %562 = tpu.matmul %559, %315, %cst_216 {dimension_numbers = #tpu.dot_dimension_numbers<[1], [0], [0], [1], [0, 0, 1, 1], [], []>} : vector<2x32xf32>, vector<32x128xf32>, vector<2x128xf32> -> vector<2x128xf32>
    %563 = arith.addf %561, %562 : vector<2x128xf32>
    %564 = vector.extract_strided_slice %563 {offsets = [0, 0], sizes = [2, 32], strides = [1, 1]} : vector<2x128xf32> to vector<2x32xf32>
    %cst_217 = arith.constant 0.000000e+00 : f32
    %565 = vector.broadcast %cst_217 : f32 to vector<2x32xf32>
    %566 = arith.subf %565, %564 : vector<2x32xf32>
    %567 = math.exp %566 : vector<2x32xf32>
    %cst_218 = arith.constant 1.000000e+00 : f32
    %568 = vector.broadcast %cst_218 : f32 to vector<2x32xf32>
    %569 = arith.addf %568, %567 : vector<2x32xf32>
    %cst_219 = arith.constant 1.000000e+00 : f32
    %570 = vector.broadcast %cst_219 : f32 to vector<2x32xf32>
    %571 = arith.divf %570, %569 : vector<2x32xf32>
    %572 = vector.extract_strided_slice %563 {offsets = [0, 32], sizes = [2, 32], strides = [1, 1]} : vector<2x128xf32> to vector<2x32xf32>
    %cst_220 = arith.constant 0.000000e+00 : f32
    %573 = vector.broadcast %cst_220 : f32 to vector<2x32xf32>
    %574 = arith.subf %573, %572 : vector<2x32xf32>
    %575 = math.exp %574 : vector<2x32xf32>
    %cst_221 = arith.constant 1.000000e+00 : f32
    %576 = vector.broadcast %cst_221 : f32 to vector<2x32xf32>
    %577 = arith.addf %576, %575 : vector<2x32xf32>
    %cst_222 = arith.constant 1.000000e+00 : f32
    %578 = vector.broadcast %cst_222 : f32 to vector<2x32xf32>
    %579 = arith.divf %578, %577 : vector<2x32xf32>
    %580 = vector.extract_strided_slice %563 {offsets = [0, 64], sizes = [2, 32], strides = [1, 1]} : vector<2x128xf32> to vector<2x32xf32>
    %581 = math.tanh %580 : vector<2x32xf32>
    %582 = vector.extract_strided_slice %563 {offsets = [0, 96], sizes = [2, 32], strides = [1, 1]} : vector<2x128xf32> to vector<2x32xf32>
    %cst_223 = arith.constant 0.000000e+00 : f32
    %583 = vector.broadcast %cst_223 : f32 to vector<2x32xf32>
    %584 = arith.subf %583, %582 : vector<2x32xf32>
    %585 = math.exp %584 : vector<2x32xf32>
    %cst_224 = arith.constant 1.000000e+00 : f32
    %586 = vector.broadcast %cst_224 : f32 to vector<2x32xf32>
    %587 = arith.addf %586, %585 : vector<2x32xf32>
    %cst_225 = arith.constant 1.000000e+00 : f32
    %588 = vector.broadcast %cst_225 : f32 to vector<2x32xf32>
    %589 = arith.divf %588, %587 : vector<2x32xf32>
    %590 = arith.mulf %579, %557 : vector<2x32xf32>
    %591 = arith.mulf %571, %581 : vector<2x32xf32>
    %592 = arith.addf %590, %591 : vector<2x32xf32>
    %593 = math.tanh %592 : vector<2x32xf32>
    %594 = arith.mulf %589, %593 : vector<2x32xf32>
    %c14_226 = arith.constant 14 : index
    %c0_227 = arith.constant 0 : index
    %595 = vector.load %arg11[%c14_226, %c0_227] : memref<16x32xf32, #tpu.memory_space<vmem>>, vector<2x32xf32>
    tpu.vector_store %arg11[%c14_226, %c0_227], %594 {strides = array<i32>} : memref<16x32xf32, #tpu.memory_space<vmem>>, vector<2x32xf32>,
    %c1_228 = arith.constant 1 : index
    %c0_229 = arith.constant 0 : index
    %c0_230 = arith.constant 0 : index
    %596 = vector.load %arg9[%c1_228, %c0_229, %c0_230] : memref<2x2x32xf32, #tpu.memory_space<vmem>>, vector<1x2x32xf32>
    %597 = vector.shape_cast %596 : vector<1x2x32xf32> to vector<2x32xf32>
    %598 = vector.shape_cast %594 : vector<2x32xf32> to vector<1x2x32xf32>
    tpu.vector_store %arg9[%c1_228, %c0_229, %c0_230], %598 {strides = array<i32>} : memref<2x2x32xf32, #tpu.memory_space<vmem>>, vector<1x2x32xf32>,
    %c1_231 = arith.constant 1 : index
    %c0_232 = arith.constant 0 : index
    %c0_233 = arith.constant 0 : index
    %599 = vector.load %arg10[%c1_231, %c0_232, %c0_233] : memref<2x2x32xf32, #tpu.memory_space<vmem>>, vector<1x2x32xf32>
    %600 = vector.shape_cast %599 : vector<1x2x32xf32> to vector<2x32xf32>
    %601 = vector.shape_cast %592 : vector<2x32xf32> to vector<1x2x32xf32>
    tpu.vector_store %arg10[%c1_231, %c0_232, %c0_233], %601 {strides = array<i32>} : memref<2x2x32xf32, #tpu.memory_space<vmem>>, vector<1x2x32xf32>,
    %c0_234 = arith.constant 0 : index
    %c0_235 = arith.constant 0 : index
    %602 = vector.load %arg11[%c0_234, %c0_235] : memref<16x32xf32, #tpu.memory_space<vmem>>, vector<16x32xf32>
    %c0_236 = arith.constant 0 : index
    %c0_237 = arith.constant 0 : index
    %603 = vector.load %arg6[%c0_236, %c0_237] : memref<32x16xf32, #tpu.memory_space<vmem>>, vector<32x16xf32>
    %cst_238 = arith.constant dense<0.000000e+00> : vector<16x16xf32>
    %604 = tpu.matmul %602, %603, %cst_238 {dimension_numbers = #tpu.dot_dimension_numbers<[1], [0], [0], [1], [0, 0, 1, 1], [], []>} : vector<16x32xf32>, vector<32x16xf32>, vector<16x16xf32> -> vector<16x16xf32>
    %c0_239 = arith.constant 0 : index
    %c0_240 = arith.constant 0 : index
    %605 = vector.load %arg7[%c0_239, %c0_240] : memref<1x16xf32, #tpu.memory_space<vmem>>, vector<1x16xf32>
    %606 = vector.broadcast %605 : vector<1x16xf32> to vector<16x16xf32>
    %607 = arith.addf %604, %606 : vector<16x16xf32>
    %c0_241 = arith.constant 0 : index
    %c0_242 = arith.constant 0 : index
    %608 = vector.load %arg8[%c0_241, %c0_242] : memref<16x16xf32, #tpu.memory_space<vmem>>, vector<16x16xf32>
    tpu.vector_store %arg8[%c0_241, %c0_242], %607 {strides = array<i32>} : memref<16x16xf32, #tpu.memory_space<vmem>>, vector<16x16xf32>,
    return
  }
}

</mosaic_0001>

<bundles_post_ra>
// kernel: tpu_custom_call.1
= control target key start
LH: loop header
LB: loop body
LE: loop exit
PB: predicated region body
PF: predicated region fallthrough
CT: control target
= control target key end

     0   :  { %16 = vsyncpa [#allocation4], 0  ;;  %s3368_s0 = inlined_call_operand.vmem [shape: f32[16,32], index: 0, kind: input, shape index: {}]   ;;  %s3369_s1 = inlined_call_operand.vmem [shape: f32[2,2,32], index: 1, kind: input, shape index: {}]   ;;  %s3370_s2 = inlined_call_operand.vmem [shape: f32[2,2,32], index: 2, kind: input, shape index: {}]   ;;  %s3371_s3 = inlined_call_operand.hbm [shape: f32[2,32,128], index: 3, kind: input, shape index: {}]   ;;  %s3372_s4 = inlined_call_operand.hbm [shape: f32[2,32,128], index: 4, kind: input, shape index: {}]   ;;  %s3373_s5 = inlined_call_operand.vmem [shape: f32[2,1,128], index: 5, kind: input, shape index: {}]   ;;  %s3374_s6 = inlined_call_operand.vmem [shape: f32[32,16], index: 6, kind: input, shape index: {}]   ;;  %s3375_s7 = inlined_call_operand.vmem [shape: f32[1,16], index: 7, kind: input, shape index: {}]   ;;  %s3376_s8 = inlined_call_operand.hbm [shape: f32[16,16], index: 8, kind: output, shape index: {0}]   ;;  %s3377_s9 = inlined_call_operand.hbm [shape: f32[2,2,32], index: 9, kind: output, shape index: {1}]   ;;  %s3378_s10 = inlined_call_operand.hbm [shape: f32[2,2,32], index: 10, kind: output, shape index: {2}]  }
   0x1   :  { %17 = vsyncpa [#allocation7], 0 }
   0x2   :  { %18 = vsyncpa [#allocation5], 0 }
   0x3   :  { %19 = vsyncpa [#allocation10], 0  ;;  %s2901_s13 = smov [#allocation3]   ;;  %s2783_s17 = scalar_lea.hbm %s3371_s3, 1024 }
   0x4   :  { %s31_s14 = sshll.u32 %s2901_s13, 4  ;;  %p2784_p0 = scmp.ne.s32.totalorder %s3371_s3, %s2783_s17  ;;  %s32_s14 = int_to_ptr.vmem [resolvable:$true] %s31_s14 }
   0x5   :  { %p2787_p1 = scmp.lt.u32.totalorder %s2783_s17, %s3371_s3 }
   0x7   :  { %p2789_p2 = pnand %p2787_p1, %p2784_p0 }
   0x9   :  { %2792 = shalt.err (!%p2789_p2)
}
   0xa   :  { %s2793_s22 = scalar_lea.vmem %s32_s14, 1024  ;;  %p2798_p4 = scmp.lt.s32.totalorder %s32_s14, %s32_s14 }
   0xb   :  { %p2794_p3 = scmp.ne.s32.totalorder %s32_s14, %s2793_s22  ;;  %p2799_p5 = scmp.lt.s32.totalorder %s2793_s22, %s2793_s22 }
   0xd   :  { %p2800_p6 = por %p2799_p5, %p2798_p4 }
   0xf   :  { %p2801_p7 = pnand %p2800_p6, %p2794_p3 }
  0x11   :  { %2804 = shalt.err (!%p2801_p7)
}
  0x12   :  { %s2902_s23 = smov 128   ;;  %s2903_s24 = smov 8  }
  0x13   :  { %37 = dma.hbm_to_vmem [thread:$0]  %s3371_s3, 1024, %s32_s14, [#allocation4], %s2902_s23, %s2902_s23, %s2903_s24  }
  0x14   :  { %s2904_s27 = smov [#allocation6]   ;;  %s2805_s11 = scalar_lea.hbm %s3372_s4, 1024 }
  0x15   :  { %s43_s28 = sshll.u32 %s2904_s27, 4  ;;  %p2806_p8 = scmp.ne.s32.totalorder %s3372_s4, %s2805_s11  ;;  %s44_s28 = int_to_ptr.vmem [resolvable:$true] %s43_s28 }
  0x16   :  { %p2809_p9 = scmp.lt.u32.totalorder %s2805_s11, %s3372_s4 }
  0x18   :  { %p2811_p10 = pnand %p2809_p9, %p2806_p8 }
  0x1a   :  { %2814 = shalt.err (!%p2811_p10)
}
  0x1b   :  { %s2815_s17 = scalar_lea.vmem %s44_s28, 1024  ;;  %p2820_p12 = scmp.lt.s32.totalorder %s44_s28, %s44_s28 }
  0x1c   :  { %p2816_p11 = scmp.ne.s32.totalorder %s44_s28, %s2815_s17  ;;  %p2821_p13 = scmp.lt.s32.totalorder %s2815_s17, %s2815_s17 }
  0x1e   :  { %p2822_p0 = por %p2821_p13, %p2820_p12 }
  0x20   :  { %p2823_p1 = pnand %p2822_p0, %p2816_p11 }
  0x22   :  { %2826 = shalt.err (!%p2823_p1)
}
  0x23   :  { %49 = dma.hbm_to_vmem [thread:$0]  %s3372_s4, 1024, %s44_s28, [#allocation7], %s2902_s23, %s2902_s23, %s2903_s24  }
  0x24   :  { %2893 = dma.done.wait [#allocation4], 1024  }
  0x25   :  { %2894 = vsyncadd [#allocation4], 4294966272 }
  0x26   :  { %2895 = dma.done.wait [#allocation7], 1024  }
  0x27   :  { %2896 = vsyncadd [#allocation7], 4294966272  ;;  %v2905_v0 = vmov 0.0|0.0   ;;  %vm2906_vm0 = vmmov 0   ;;  %v2907_v1 = vmov 0.0   ;;  %v69_v2 = vld [vmem:[#allocation3] sm:$0xff] }
  0x28   :  { %2529 = vmatprep.subr.bf16.mxu1 %v2905_v0  ;;  %2331 = vmatprep.mubr.msk.f32.mxu1 %vm2906_vm0, %v2907_v1  ;;  %v70_v3 = vld [vmem:[#allocation3 + $0x8] sm:$0xff]  ;;  %v163_v4 = vld [vmem:[#allocation6] sm:$0xff]  ;;  %vm64_vm1 = vcmask 261120   ;;  %v71_v7 = vld [vmem:[#allocation3 + $0x10] sm:$0xff]  ;;  %s2908_s26 = smov 64   ;;  %s2909_s29 = smov 32  }
  0x29   :  { %v2521_v5 = vpack.c.bf16 %v70_v3, %v69_v2  ;;  %v164_v6 = vld [vmem:[#allocation6 + $0x8] sm:$0xff]  ;;  %v72_v8 = vld [vmem:[#allocation3 + $0x18] sm:$0xff]  ;;  %v62_v11 = vld [vmem:[%s3368_s0] sm:$0xff]  ;;  %vm273_vm2 = vcmask 254976   ;;  %vm382_vm3 = vcmask 257026   ;;  %vm606_vm4 = vcmask 261126  }
  0x2a   :  { %v3003_v9 = vpack.c.bf16 %v164_v6, %v163_v4  ;;  %v2525_v10 = vpack.c.bf16 %v72_v8, %v71_v7  ;;  %v165_v12 = vld [vmem:[#allocation6 + $0x10] sm:$0xff]  ;;  %v166_v13 = vld [vmem:[#allocation6 + $0x18] sm:$0xff]  ;;  %65 = vst.msk [vmem:[#allocation2] sm:$0xff] %vm64_vm1, %v62_v11  ;;  %vm494_vm5 = vcmask 259076  }
  0x2b   :  { %2522 = vmatprep.subr.bf16.mxu0 %v2521_v5  ;;  %v63_v14 = vld [vmem:[%s3368_s0 + $0x8] sm:$0xff]  ;;  %v3013_v15 = vpack.c.bf16 %v166_v13, %v165_v12  ;;  %v161_v16 = vld [vmem:[%s3369_s1] sm:$0x3] }
  0x2c   :  { %2524 = vmatpush3.bf16.msra.mxu0 %v2521_v5  ;;  %2531 = vmatpush3.bf16.msra.mxu1 %v3003_v9  ;;  %66 = vst.msk [vmem:[#allocation2 + $0x8] sm:$0xff] %vm64_vm1, %v63_v14  ;;  %v2186_v19 = vld [vmem:[%s3373_s5] ss:$0 sm:$0xff] }
  0x2d   :  { %2526 = vmatprep.subr.bf16.mxu0 %v2525_v10  ;;  %2532 = vmatprep.subr.bf16.mxu1 %v2905_v0  ;;  %v162_v28 = vld [vmem:[%s3370_s2] sm:$0x3] }
  0x30   :  { %2528 = vmatpush3.bf16.msra.mxu0 %v2525_v10  ;;  %2534 = vmatpush3.bf16.msra.mxu1 %v3013_v15 }
  0x31   :  { %2535 = vmatprep.subr.bf16.mxu0 %v2905_v0  ;;  %2541 = vmatprep.subr.bf16.mxu1 %v2905_v0  ;;  %v67_v17 = vld [vmem:[#allocation2] sm:$0xff] }
  0x32   :  { %2320 = vmatprep.mubr.msk.f32.mxu0 %vm64_vm1, %v67_v17 }
  0x33   :  { %v68_v18 = vld [vmem:[#allocation2 + $0x8] sm:$0xff]  ;;  %2332 = vmatmul.mubr.msk.f32.vlgmr.msra.gmra.mrb[0].mxu1 %vm64_vm1, %v161_v16 }
  0x34   :  { %2321 = vmatmul.mubr.msk.f32.vlgmr.msra.gmra.mrb[0].mxu0 %vm64_vm1, %v68_v18  ;;  %2543 = vmatpush3.bf16.msra.mxu1 %v3003_v9 }
  0x35   :  { %2537 = vmatpush3.bf16.msra.mxu0 %v3003_v9  ;;  %2342 = vmatprep.mubr.msk.f32.mxu0 %vm2906_vm0, %v2907_v1 }
  0x36   :  { %2538 = vmatprep.subr.bf16.mxu0 %v2905_v0  ;;  %2544 = vmatprep.subr.bf16.mxu1 %v2905_v0 }
  0x37   :  { %2353 = vmatprep.mubr.msk.f32.mxu1 %vm2906_vm0, %v2907_v1 }
  0x38   :  { %2546 = vmatpush3.bf16.msra.mxu1 %v3013_v15 }
  0x39   :  { %2540 = vmatpush3.bf16.msra.mxu0 %v3013_v15  ;;  %2553 = vmatprep.subr.bf16.mxu1 %v2905_v0 }
  0x3a   :  { %2547 = vmatprep.subr.bf16.mxu0 %v2905_v0 }
 0x106   :  { %v236_v20 = vpop.f32.mrb[0].mxu1 }
 0x107   :  { %v2322_v21 = vpop.f32.mrb[0].mxu0  ;;  %v2333_v22 = vpop.f32.mrb[1].mxu1 }
 0x108   :  { %v3041_v23 = vadd.f32 %v2322_v21, %v2186_v19  ;;  %v152_v24 = vpop.f32.mrb[1].mxu0 }
 0x109   :  { %v3043_v25 = vadd.f32 %v2186_v19, %v152_v24 }
 0x10b   :  { %v240_v26 = vadd.f32 %v236_v20, %v3043_v25 }
 0x10d   :  { %2655 = vtanh.f32 %v240_v26  ;;  %v241_v29 = vsub.f32 0.0, %v240_v26 }
 0x10f   :  { %v242_v30 = vmul.f32 1.442695, %v241_v29 }
 0x111   :  { %2657 = vpow2.f32 %v242_v30 }
 0x117   :  { %v2656_v27 = vpop.eup %2655 }
 0x118   :  { %254 = vrot.lane.b32.xlu0 %v2656_v27, %s2908_s26 }
 0x11b   :  { %v2658_v31 = vpop.eup %2657 }
 0x11c   :  { %249 = vrot.lane.b32.xlu0 %v162_v28, %s2909_s29  ;;  %v244_v32 = vadd.f32 1.0, %v2658_v31 }
 0x11e   :  { %2659 = vrcp.f32 %v244_v32 }
 0x128   :  { %v2660_v33 = vpop.eup %2659 }
 0x18a   :  { %v255_v34 = vpop.permute.xlu0 %254 }
 0x18b   :  { %v257_v35 = vmul.f32 %v2660_v33, %v255_v34 }
 0x18d   :  { %259 = vrot.lane.b32.xlu1 %v257_v35, %s2909_s29 }
 0x18e   :  { %v250_v36 = vpop.permute.xlu0 %249 }
 0x18f   :  { %v252_v37 = vmul.f32 %v2660_v33, %v250_v36 }
 0x1ff   :  { %v260_v38 = vpop.permute.xlu1 %259 }
 0x200   :  { %v262_v39 = vadd.f32 %v260_v38, %v252_v37 }
 0x202   :  { %2661 = vtanh.f32 %v262_v39  ;;  %v359_v56 = vrot.slane %v262_v39, 6 }
 0x20c   :  { %v2662_v40 = vpop.eup %2661 }
 0x20d   :  { %265 = vrot.lane.b32.xlu1 %v2662_v40, %s2908_s26 }
 0x27f   :  { %v266_v41 = vpop.permute.xlu1 %265 }
 0x280   :  { %v268_v42 = vmul.f32 %v2660_v33, %v266_v41 }
 0x282   :  { %270 = vrot.lane.b32.xlu0 %v268_v42, %s2909_s29 }
 0x2f4   :  { %v271_v43 = vpop.permute.xlu0 %270 }
 0x2f5   :  { %274 = vst.msk [vmem:[#allocation2] sm:$0x3] %vm273_vm2, %v271_v43  ;;  %2343 = vmatmul.mubr.msk.f32.vlgmr.msra.gmra.mrb[2].mxu0 %vm64_vm1, %v271_v43 }
 0x2f6   :  { %2549 = vmatpush3.bf16.msra.mxu0 %v3003_v9  ;;  %2364 = vmatprep.mubr.msk.f32.mxu0 %vm2906_vm0, %v2907_v1 }
 0x2f7   :  { %2550 = vmatprep.subr.bf16.mxu0 %v2905_v0 }
 0x2fa   :  { %2552 = vmatpush3.bf16.msra.mxu0 %v3013_v15 }
 0x2fb   :  { %2559 = vmatprep.subr.bf16.mxu0 %v2905_v0 }
 0x3c8   :  { %v343_v44 = vpop.f32.mrb[2].mxu0 }
 0x3c9   :  { %v348_v45 = vrot.slane %v343_v44, 6  ;;  %v2344_v46 = vpop.f32.mrb[3].mxu0 }
 0x3cb   :  { %v350_v47 = vadd.f32 %v348_v45, %v3043_v25 }
 0x3cd   :  { %2663 = vtanh.f32 %v350_v47  ;;  %v351_v49 = vsub.f32 0.0, %v350_v47 }
 0x3cf   :  { %v352_v50 = vmul.f32 1.442695, %v351_v49 }
 0x3d1   :  { %2665 = vpow2.f32 %v352_v50 }
 0x3d7   :  { %v2664_v48 = vpop.eup %2663 }
 0x3d8   :  { %363 = vrot.lane.b32.xlu1 %v2664_v48, %s2908_s26 }
 0x3db   :  { %v2666_v51 = vpop.eup %2665 }
 0x3dc   :  { %v354_v52 = vadd.f32 1.0, %v2666_v51 }
 0x3de   :  { %2667 = vrcp.f32 %v354_v52 }
 0x3e8   :  { %v2668_v53 = vpop.eup %2667 }
 0x3e9   :  { %v361_v57 = vmul.f32 %v2668_v53, %v359_v56 }
 0x44a   :  { %v364_v54 = vpop.permute.xlu1 %363 }
 0x44b   :  { %v366_v55 = vmul.f32 %v2668_v53, %v364_v54 }
 0x44d   :  { %368 = vrot.lane.b32.xlu0 %v366_v55, %s2909_s29 }
 0x4bf   :  { %v369_v58 = vpop.permute.xlu0 %368 }
 0x4c0   :  { %v371_v59 = vadd.f32 %v369_v58, %v361_v57 }
 0x4c2   :  { %2669 = vtanh.f32 %v371_v59  ;;  %v471_v17 = vrot.slane %v371_v59, 6 }
 0x4cc   :  { %v2670_v60 = vpop.eup %2669 }
 0x4cd   :  { %374 = vrot.lane.b32.xlu1 %v2670_v60, %s2908_s26 }
 0x53f   :  { %v375_v61 = vpop.permute.xlu1 %374 }
 0x540   :  { %v3066_v62 = vmul.f32 %v2668_v53, %v375_v61 }
 0x542   :  { %v384_v63 = vrot.slane %v3066_v62, 2 }
 0x544   :  { %385 = vrot.lane.b32.xlu0 %v384_v63, %s2909_s29 }
 0x5b6   :  { %v386_v2 = vpop.permute.xlu0 %385 }
 0x5b7   :  { %2354 = vmatmul.mubr.msk.f32.vlgmr.msra.gmra.mrb[2].mxu1 %vm64_vm1, %v386_v2 }
 0x5b8   :  { %2555 = vmatpush3.bf16.msra.mxu1 %v3003_v9  ;;  %2375 = vmatprep.mubr.msk.f32.mxu1 %vm2906_vm0, %v2907_v1 }
 0x5b9   :  { %2556 = vmatprep.subr.bf16.mxu1 %v2905_v0 }
 0x5bc   :  { %2558 = vmatpush3.bf16.msra.mxu1 %v3013_v15 }
 0x5bd   :  { %2565 = vmatprep.subr.bf16.mxu1 %v2905_v0 }
 0x68a   :  { %v455_v3 = vpop.f32.mrb[2].mxu1 }
 0x68b   :  { %v460_v4 = vrot.slane %v455_v3, 4  ;;  %v2355_v5 = vpop.f32.mrb[3].mxu1 }
 0x68d   :  { %v462_v6 = vadd.f32 %v460_v4, %v3043_v25 }
 0x68f   :  { %2671 = vtanh.f32 %v462_v6  ;;  %v463_v8 = vsub.f32 0.0, %v462_v6 }
 0x691   :  { %v464_v10 = vmul.f32 1.442695, %v463_v8 }
 0x693   :  { %2673 = vpow2.f32 %v464_v10 }
 0x699   :  { %v2672_v7 = vpop.eup %2671 }
 0x69a   :  { %475 = vrot.lane.b32.xlu1 %v2672_v7, %s2908_s26 }
 0x69d   :  { %v2674_v11 = vpop.eup %2673 }
 0x69e   :  { %v466_v12 = vadd.f32 1.0, %v2674_v11 }
 0x6a0   :  { %2675 = vrcp.f32 %v466_v12 }
 0x6aa   :  { %v2676_v13 = vpop.eup %2675 }
 0x6ab   :  { %v473_v18 = vmul.f32 %v2676_v13, %v471_v17 }
 0x70c   :  { %v476_v14 = vpop.permute.xlu1 %475 }
 0x70d   :  { %v478_v16 = vmul.f32 %v2676_v13, %v476_v14 }
 0x70f   :  { %480 = vrot.lane.b32.xlu0 %v478_v16, %s2909_s29 }
 0x781   :  { %v481_v19 = vpop.permute.xlu0 %480 }
 0x782   :  { %v483_v20 = vadd.f32 %v481_v19, %v473_v18 }
 0x784   :  { %2677 = vtanh.f32 %v483_v20  ;;  %v583_v40 = vrot.slane %v483_v20, 6 }
 0x78e   :  { %v2678_v21 = vpop.eup %2677 }
 0x78f   :  { %486 = vrot.lane.b32.xlu1 %v2678_v21, %s2908_s26 }
 0x801   :  { %v487_v22 = vpop.permute.xlu1 %486 }
 0x802   :  { %v3081_v24 = vmul.f32 %v2676_v13, %v487_v22 }
 0x804   :  { %v496_v26 = vrot.slane %v3081_v24, 4 }
 0x806   :  { %497 = vrot.lane.b32.xlu0 %v496_v26, %s2909_s29 }
 0x878   :  { %v498_v27 = vpop.permute.xlu0 %497 }
 0x879   :  { %2365 = vmatmul.mubr.msk.f32.vlgmr.msra.gmra.mrb[4].mxu0 %vm64_vm1, %v498_v27 }
 0x87a   :  { %2561 = vmatpush3.bf16.msra.mxu0 %v3003_v9  ;;  %2386 = vmatprep.mubr.msk.f32.mxu0 %vm2906_vm0, %v2907_v1 }
 0x87b   :  { %2562 = vmatprep.subr.bf16.mxu0 %v2905_v0 }
 0x87e   :  { %2564 = vmatpush3.bf16.msra.mxu0 %v3013_v15 }
 0x87f   :  { %2571 = vmatprep.subr.bf16.mxu0 %v2905_v0 }
 0x94c   :  { %v567_v28 = vpop.f32.mrb[4].mxu0 }
 0x94d   :  { %v572_v29 = vrot.slane %v567_v28, 2  ;;  %v2366_v30 = vpop.f32.mrb[5].mxu0 }
 0x94f   :  { %v574_v31 = vadd.f32 %v572_v29, %v3043_v25 }
 0x951   :  { %2679 = vtanh.f32 %v574_v31  ;;  %v575_v33 = vsub.f32 0.0, %v574_v31 }
 0x953   :  { %v576_v34 = vmul.f32 1.442695, %v575_v33 }
 0x955   :  { %2681 = vpow2.f32 %v576_v34 }
 0x95b   :  { %v2680_v32 = vpop.eup %2679 }
 0x95c   :  { %587 = vrot.lane.b32.xlu1 %v2680_v32, %s2908_s26 }
 0x95f   :  { %v2682_v35 = vpop.eup %2681 }
 0x960   :  { %v578_v36 = vadd.f32 1.0, %v2682_v35 }
 0x962   :  { %2683 = vrcp.f32 %v578_v36 }
 0x96c   :  { %v2684_v37 = vpop.eup %2683 }
 0x96d   :  { %v585_v41 = vmul.f32 %v2684_v37, %v583_v40 }
 0x9ce   :  { %v588_v38 = vpop.permute.xlu1 %587 }
 0x9cf   :  { %v590_v39 = vmul.f32 %v2684_v37, %v588_v38 }
 0x9d1   :  { %592 = vrot.lane.b32.xlu0 %v590_v39, %s2909_s29 }
 0xa43   :  { %v593_v42 = vpop.permute.xlu0 %592 }
 0xa44   :  { %v595_v43 = vadd.f32 %v593_v42, %v585_v41 }
 0xa46   :  { %2685 = vtanh.f32 %v595_v43  ;;  %v692_v59 = vrot.slane %v595_v43, 6 }
 0xa50   :  { %v2686_v25 = vpop.eup %2685 }
 0xa51   :  { %598 = vrot.lane.b32.xlu1 %v2686_v25, %s2908_s26 }
 0xac3   :  { %v599_v44 = vpop.permute.xlu1 %598 }
 0xac4   :  { %v3096_v45 = vmul.f32 %v2684_v37, %v599_v44 }
 0xac6   :  { %v608_v46 = vrot.slane %v3096_v45, 6 }
 0xac8   :  { %609 = vrot.lane.b32.xlu0 %v608_v46, %s2909_s29 }
 0xb3a   :  { %v610_v47 = vpop.permute.xlu0 %609 }
 0xb3b   :  { %2376 = vmatmul.mubr.msk.f32.vlgmr.msra.gmra.mrb[4].mxu1 %vm64_vm1, %v610_v47 }
 0xb3c   :  { %2567 = vmatpush3.bf16.msra.mxu1 %v3003_v9  ;;  %2397 = vmatprep.mubr.msk.f32.mxu1 %vm2906_vm0, %v2907_v1 }
 0xb3d   :  { %2568 = vmatprep.subr.bf16.mxu1 %v2905_v0 }
 0xb40   :  { %2570 = vmatpush3.bf16.msra.mxu1 %v3013_v15 }
 0xc0e   :  { %v679_v48 = vpop.f32.mrb[4].mxu1 }
 0xc0f   :  { %v683_v49 = vadd.f32 %v679_v48, %v3041_v23  ;;  %v2377_v50 = vpop.f32.mrb[5].mxu1 }
 0xc11   :  { %2687 = vtanh.f32 %v683_v49  ;;  %v684_v52 = vsub.f32 0.0, %v683_v49 }
 0xc13   :  { %v685_v53 = vmul.f32 1.442695, %v684_v52 }
 0xc15   :  { %2689 = vpow2.f32 %v685_v53 }
 0xc1b   :  { %v2688_v51 = vpop.eup %2687 }
 0xc1c   :  { %696 = vrot.lane.b32.xlu1 %v2688_v51, %s2908_s26 }
 0xc1f   :  { %v2690_v54 = vpop.eup %2689 }
 0xc20   :  { %v687_v55 = vadd.f32 1.0, %v2690_v54 }
 0xc22   :  { %2691 = vrcp.f32 %v687_v55 }
 0xc2c   :  { %v2692_v56 = vpop.eup %2691 }
 0xc2d   :  { %v694_v60 = vmul.f32 %v2692_v56, %v692_v59 }
 0xc8e   :  { %v697_v57 = vpop.permute.xlu1 %696 }
 0xc8f   :  { %v699_v58 = vmul.f32 %v2692_v56, %v697_v57 }
 0xc91   :  { %701 = vrot.lane.b32.xlu0 %v699_v58, %s2909_s29 }
 0xd03   :  { %v702_v61 = vpop.permute.xlu0 %701 }
 0xd04   :  { %v704_v63 = vadd.f32 %v702_v61, %v694_v60 }
 0xd06   :  { %2693 = vtanh.f32 %v704_v63  ;;  %v800_v18 = vrot.slane %v704_v63, 6 }
 0xd10   :  { %v2694_v2 = vpop.eup %2693 }
 0xd11   :  { %707 = vrot.lane.b32.xlu1 %v2694_v2, %s2908_s26 }
 0xd83   :  { %v708_v3 = vpop.permute.xlu1 %707 }
 0xd84   :  { %v710_v4 = vmul.f32 %v2692_v56, %v708_v3 }
 0xd86   :  { %712 = vrot.lane.b32.xlu0 %v710_v4, %s2909_s29 }
 0xdf8   :  { %v713_v5 = vpop.permute.xlu0 %712 }
 0xdf9   :  { %715 = vst.msk [vmem:[#allocation2 + $0x8] sm:$0x3] %vm273_vm2, %v713_v5  ;;  %2387 = vmatmul.mubr.msk.f32.vlgmr.msra.gmra.mrb[6].mxu0 %vm64_vm1, %v713_v5 }
 0xdfa   :  { %2573 = vmatpush3.bf16.msra.mxu0 %v3003_v9  ;;  %2408 = vmatprep.mubr.msk.f32.mxu0 %vm2906_vm0, %v2907_v1 }
 0xdfb   :  { %2574 = vmatprep.subr.bf16.mxu0 %v2905_v0 }
 0xdfe   :  { %2576 = vmatpush3.bf16.msra.mxu0 %v3013_v15 }
 0xdff   :  { %2585 = vmatprep.subr.bf16.mxu0 %v2905_v0 }
 0xecc   :  { %v784_v6 = vpop.f32.mrb[6].mxu0 }
 0xecd   :  { %v789_v7 = vrot.slane %v784_v6, 6  ;;  %v2388_v8 = vpop.f32.mrb[7].mxu0 }
 0xece   :  { %v1056_v8 = vld [vmem:[#allocation3 + $0x28] sm:$0xff] }
 0xecf   :  { %v791_v10 = vadd.f32 %v789_v7, %v3041_v23  ;;  %v1055_v7 = vld [vmem:[#allocation3 + $0x20] sm:$0xff] }
 0xed1   :  { %2695 = vtanh.f32 %v791_v10  ;;  %v792_v12 = vsub.f32 0.0, %v791_v10  ;;  %v2577_v10 = vpack.c.bf16 %v1056_v8, %v1055_v7 }
 0xed3   :  { %v793_v9 = vmul.f32 1.442695, %v792_v12  ;;  %2578 = vmatprep.subr.bf16.mxu1 %v2577_v10  ;;  %v1154_v12 = vld [vmem:[#allocation6 + $0x28] sm:$0xff] }
 0xed5   :  { %2697 = vpow2.f32 %v793_v9  ;;  %v1057_v9 = vld [vmem:[#allocation3 + $0x30] sm:$0xff] }
 0xedb   :  { %v2696_v11 = vpop.eup %2695 }
 0xedc   :  { %804 = vrot.lane.b32.xlu1 %v2696_v11, %s2908_s26  ;;  %v1153_v11 = vld [vmem:[#allocation6 + $0x20] sm:$0xff] }
 0xedf   :  { %v2698_v13 = vpop.eup %2697 }
 0xee0   :  { %v795_v14 = vadd.f32 1.0, %v2698_v13  ;;  %v3155_v13 = vpack.c.bf16 %v1154_v12, %v1153_v11 }
 0xee2   :  { %2699 = vrcp.f32 %v795_v14  ;;  %v1058_v14 = vld [vmem:[#allocation3 + $0x38] sm:$0xff] }
 0xeec   :  { %v2700_v16 = vpop.eup %2699 }
 0xeed   :  { %v802_v19 = vmul.f32 %v2700_v16, %v800_v18  ;;  %v2201_v18 = vld [vmem:[%s3369_s1 + $0x2] sm:$0x3] }
 0xf4e   :  { %v805_v17 = vpop.permute.xlu1 %804 }
 0xf4f   :  { %v807_v15 = vmul.f32 %v2700_v16, %v805_v17  ;;  %v1156_v17 = vld [vmem:[#allocation6 + $0x38] sm:$0xff] }
 0xf51   :  { %809 = vrot.lane.b32.xlu0 %v807_v15, %s2909_s29  ;;  %v2581_v15 = vpack.c.bf16 %v1058_v14, %v1057_v9 }
 0xfc3   :  { %v810_v20 = vpop.permute.xlu0 %809 }
 0xfc4   :  { %v812_v21 = vadd.f32 %v810_v20, %v802_v19 }
 0xfc6   :  { %2701 = vtanh.f32 %v812_v21  ;;  %v911_v42 = vrot.slane %v812_v21, 6 }
 0xfd0   :  { %v2702_v22 = vpop.eup %2701 }
 0xfd1   :  { %815 = vrot.lane.b32.xlu1 %v2702_v22, %s2908_s26  ;;  %v2202_v22 = vld [vmem:[%s3370_s2 + $0x2] sm:$0x3] }
0x1043   :  { %v816_v26 = vpop.permute.xlu1 %815 }
0x1044   :  { %v3123_v27 = vmul.f32 %v2700_v16, %v816_v26  ;;  %v1155_v16 = vld [vmem:[#allocation6 + $0x30] sm:$0xff] }
0x1046   :  { %v824_v28 = vrot.slane %v3123_v27, 2 }
0x1048   :  { %825 = vrot.lane.b32.xlu0 %v824_v28, %s2909_s29 }
0x10ba   :  { %v826_v29 = vpop.permute.xlu0 %825 }
0x10bb   :  { %2398 = vmatmul.mubr.msk.f32.vlgmr.msra.gmra.mrb[6].mxu1 %vm64_vm1, %v826_v29 }
0x10bc   :  { %2580 = vmatpush3.bf16.msra.mxu1 %v2577_v10 }
0x10bd   :  { %2582 = vmatprep.subr.bf16.mxu1 %v2581_v15 }
0x10c0   :  { %2584 = vmatpush3.bf16.msra.mxu1 %v2581_v15 }
0x10c1   :  { %2591 = vmatprep.subr.bf16.mxu1 %v2905_v0 }
0x118e   :  { %v895_v30 = vpop.f32.mrb[6].mxu1 }
0x118f   :  { %v900_v31 = vrot.slane %v895_v30, 4  ;;  %v2399_v32 = vpop.f32.mrb[7].mxu1 }
0x1190   :  { %v2198_v32 = vld [vmem:[%s3373_s5 + $0x1] ss:$0 sm:$0xff]  ;;  %s2910_s5 = smov 96  }
0x1191   :  { %v902_v33 = vadd.f32 %v900_v31, %v3041_v23 }
0x1193   :  { %2703 = vtanh.f32 %v902_v33  ;;  %v903_v35 = vsub.f32 0.0, %v902_v33 }
0x1195   :  { %v904_v36 = vmul.f32 1.442695, %v903_v35 }
0x1197   :  { %2705 = vpow2.f32 %v904_v36 }
0x119d   :  { %v2704_v34 = vpop.eup %2703 }
0x119e   :  { %915 = vrot.lane.b32.xlu1 %v2704_v34, %s2908_s26 }
0x11a1   :  { %v2706_v37 = vpop.eup %2705 }
0x11a2   :  { %v906_v38 = vadd.f32 1.0, %v2706_v37 }
0x11a4   :  { %2707 = vrcp.f32 %v906_v38 }
0x11ae   :  { %v2708_v39 = vpop.eup %2707 }
0x11af   :  { %v913_v43 = vmul.f32 %v2708_v39, %v911_v42 }
0x1210   :  { %v916_v40 = vpop.permute.xlu1 %915 }
0x1211   :  { %v918_v41 = vmul.f32 %v2708_v39, %v916_v40 }
0x1213   :  { %920 = vrot.lane.b32.xlu0 %v918_v41, %s2909_s29 }
0x1285   :  { %v921_v25 = vpop.permute.xlu0 %920 }
0x1286   :  { %v923_v44 = vadd.f32 %v921_v25, %v913_v43 }
0x1288   :  { %2709 = vtanh.f32 %v923_v44 }
0x1292   :  { %v2710_v46 = vpop.eup %2709 }
0x1293   :  { %926 = vrot.lane.b32.xlu1 %v2710_v46, %s2908_s26 }
0x1305   :  { %v927_v47 = vpop.permute.xlu1 %926 }
0x1306   :  { %v929_v48 = vmul.f32 %v2708_v39, %v927_v47 }
0x1308   :  { %v935_v49 = vrot.slane %v929_v48, 4 }
0x130a   :  { %936 = vrot.lane.b32.xlu0 %v935_v49, %s2909_s29 }
0x137c   :  { %v937_v50 = vpop.permute.xlu0 %936 }
0x137d   :  { %2409 = vmatmul.mubr.msk.f32.vlgmr.msra.gmra.mrb[8].mxu0 %vm64_vm1, %v937_v50 }
0x137e   :  { %2430 = vmatprep.mubr.msk.f32.mxu0 %vm2906_vm0, %v2907_v1  ;;  %2587 = vmatpush3.bf16.msra.mxu0 %v3155_v13 }
0x137f   :  { %2588 = vmatprep.subr.bf16.mxu0 %v2905_v0 }
0x1450   :  { %v1006_v51 = vpop.f32.mrb[8].mxu0 }
0x1451   :  { %v1011_v52 = vrot.slane %v1006_v51, 2  ;;  %v2410_v53 = vpop.f32.mrb[9].mxu0 }
0x1453   :  { %v1013_v54 = vadd.f32 %v1011_v52, %v3041_v23  ;;  %v1022_v23 = vrot.slane %v923_v44, 6 }
0x1455   :  { %2711 = vtanh.f32 %v1013_v54  ;;  %v1014_v56 = vsub.f32 0.0, %v1013_v54 }
0x1457   :  { %v1015_v57 = vmul.f32 1.442695, %v1014_v56 }
0x1459   :  { %2713 = vpow2.f32 %v1015_v57 }
0x145f   :  { %v2712_v55 = vpop.eup %2711 }
0x1460   :  { %1026 = vrot.lane.b32.xlu1 %v2712_v55, %s2908_s26 }
0x1463   :  { %v2714_v58 = vpop.eup %2713 }
0x1464   :  { %v1017_v59 = vadd.f32 1.0, %v2714_v58 }
0x1466   :  { %2715 = vrcp.f32 %v1017_v59 }
0x1470   :  { %v2716_v60 = vpop.eup %2715 }
0x1471   :  { %v1024_v2 = vmul.f32 %v2716_v60, %v1022_v23 }
0x14d2   :  { %v1027_v61 = vpop.permute.xlu1 %1026 }
0x14d3   :  { %v1029_v63 = vmul.f32 %v2716_v60, %v1027_v61 }
0x14d5   :  { %1031 = vrot.lane.b32.xlu0 %v1029_v63, %s2909_s29 }
0x14d9   :  { %379 = vrot.lane.b32.xlu0 %v3066_v62, %s2909_s29 }
0x14dd   :  { %603 = vrot.lane.b32.xlu0 %v3096_v45, %s2909_s29 }
0x14e1   :  { %931 = vrot.lane.b32.xlu0 %v929_v48, %s2909_s29 }
0x1547   :  { %v1032_v3 = vpop.permute.xlu0 %1031 }
0x1548   :  { %v3144_v4 = vadd.f32 %v1032_v3, %v1024_v2 }
0x154a   :  { %2717 = vtanh.f32 %v3144_v4 }
0x154b   :  { %v380_v5 = vpop.permute.xlu0 %379 }
0x154c   :  { %383 = vst.msk [vmem:[#allocation2] sm:$0xc] %vm382_vm3, %v380_v5 }
0x154f   :  { %v604_v6 = vpop.permute.xlu0 %603 }
0x1550   :  { %607 = vst.msk [vmem:[#allocation2] sm:$0xc0] %vm606_vm4, %v604_v6 }
0x1553   :  { %v932_v62 = vpop.permute.xlu0 %931 }
0x1554   :  { %v2718_v45 = vpop.eup %2717  ;;  %934 = vst.msk [vmem:[#allocation2 + $0x8] sm:$0x30] %vm494_vm5, %v932_v62 }
0x1555   :  { %1037 = vrot.lane.b32.xlu1 %v2718_v45, %s2908_s26 }
0x1559   :  { %491 = vrot.lane.b32.xlu1 %v3081_v24, %s2909_s29  ;;  %v3158_v24 = vpack.c.bf16 %v1156_v17, %v1155_v16 }
0x155b   :  { %2590 = vmatpush3.bf16.msra.mxu0 %v3158_v24 }
0x155c   :  { %2597 = vmatprep.subr.bf16.mxu0 %v2905_v0 }
0x155d   :  { %820 = vrot.lane.b32.xlu1 %v3123_v27, %s2909_s29 }
0x155e   :  { %2431 = vmatmul.mubr.msk.f32.vlgmr.msra.gmra.mrb[10].mxu0 %vm64_vm1, %v2201_v18 }
0x155f   :  { %2599 = vmatpush3.bf16.msra.mxu0 %v3155_v13  ;;  %2452 = vmatprep.mubr.msk.f32.mxu0 %vm2906_vm0, %v2907_v1 }
0x1560   :  { %2600 = vmatprep.subr.bf16.mxu0 %v2905_v0 }
0x1563   :  { %2602 = vmatpush3.bf16.msra.mxu0 %v3158_v24 }
0x1564   :  { %2609 = vmatprep.subr.bf16.mxu0 %v2905_v0 }
0x15c7   :  { %v1038_v19 = vpop.permute.xlu1 %1037 }
0x15c8   :  { %v1040_v20 = vmul.f32 %v2716_v60, %v1038_v19 }
0x15ca   :  { %1042 = vrot.lane.b32.xlu1 %v1040_v20, %s2909_s29 }
0x15cb   :  { %v492_v21 = vpop.permute.xlu1 %491 }
0x15cc   :  { %495 = vst.msk [vmem:[#allocation2] sm:$0x30] %vm494_vm5, %v492_v21 }
0x15ce   :  { %1239 = vrot.lane.b32.xlu1 %v2202_v22, %s2909_s29 }
0x15cf   :  { %v821_v26 = vpop.permute.xlu1 %820 }
0x15d0   :  { %823 = vst.msk [vmem:[#allocation2 + $0x8] sm:$0xc] %vm382_vm3, %v821_v26 }
0x15d3   :  { %v1052_v27 = vld [vmem:[#allocation2] sm:$0xff] }
0x15d4   :  { %2419 = vmatprep.mubr.msk.f32.mxu1 %vm64_vm1, %v1052_v27 }
0x1631   :  { %v1226_v30 = vpop.f32.mrb[10].mxu0 }
0x1632   :  { %v2432_v31 = vpop.f32.mrb[11].mxu0 }
0x163c   :  { %v1043_v28 = vpop.permute.xlu1 %1042 }
0x163d   :  { %1045 = vst.msk [vmem:[#allocation2 + $0x8] sm:$0xc0] %vm606_vm4, %v1043_v28  ;;  %1046 = vst.msk [vmem:[#allocation9 - $0x6] sm:$0xc0] %vm606_vm4, %v1043_v28 }
0x1640   :  { %v1240_v46 = vpop.permute.xlu1 %1239 }
0x1644   :  { %v1053_v29 = vld [vmem:[#allocation2 + $0x8] sm:$0xff] }
0x1645   :  { %2420 = vmatmul.mubr.msk.f32.vlgmr.msra.gmra.mrb[8].mxu1 %vm64_vm1, %v1053_v29 }
0x1646   :  { %2593 = vmatpush3.bf16.msra.mxu1 %v3155_v13  ;;  %2441 = vmatprep.mubr.msk.f32.mxu1 %vm2906_vm0, %v2907_v1 }
0x1647   :  { %2594 = vmatprep.subr.bf16.mxu1 %v2905_v0 }
0x164a   :  { %2596 = vmatpush3.bf16.msra.mxu1 %v3158_v24 }
0x164b   :  { %2603 = vmatprep.subr.bf16.mxu1 %v2905_v0 }
0x1718   :  { %v2421_v33 = vpop.f32.mrb[8].mxu1 }
0x1719   :  { %v3194_v34 = vadd.f32 %v2421_v33, %v2198_v32  ;;  %v1139_v35 = vpop.f32.mrb[9].mxu1 }
0x171a   :  { %v3196_v36 = vadd.f32 %v2198_v32, %v1139_v35 }
0x171c   :  { %v1230_v37 = vadd.f32 %v1226_v30, %v3196_v36 }
0x171e   :  { %2719 = vtanh.f32 %v1230_v37  ;;  %v1231_v39 = vsub.f32 0.0, %v1230_v37 }
0x1720   :  { %v1232_v40 = vmul.f32 1.442695, %v1231_v39 }
0x1722   :  { %2721 = vpow2.f32 %v1232_v40 }
0x1728   :  { %v2720_v38 = vpop.eup %2719 }
0x1729   :  { %1244 = vrot.lane.b32.xlu0 %v2720_v38, %s2908_s26 }
0x172c   :  { %v2722_v41 = vpop.eup %2721 }
0x172d   :  { %v1234_v42 = vadd.f32 1.0, %v2722_v41 }
0x172f   :  { %2723 = vrcp.f32 %v1234_v42 }
0x1739   :  { %v2724_v43 = vpop.eup %2723 }
0x173a   :  { %v1242_v47 = vmul.f32 %v2724_v43, %v1240_v46 }
0x179b   :  { %v1245_v25 = vpop.permute.xlu0 %1244 }
0x179c   :  { %v1247_v44 = vmul.f32 %v2724_v43, %v1245_v25 }
0x179e   :  { %1249 = vrot.lane.b32.xlu0 %v1247_v44, %s2909_s29 }
0x1810   :  { %v1250_v48 = vpop.permute.xlu0 %1249 }
0x1811   :  { %v1252_v49 = vadd.f32 %v1250_v48, %v1242_v47 }
0x1813   :  { %2725 = vtanh.f32 %v1252_v49  ;;  %v1348_v5 = vrot.slane %v1252_v49, 6 }
0x181d   :  { %v2726_v50 = vpop.eup %2725 }
0x181e   :  { %1255 = vrot.lane.b32.xlu1 %v2726_v50, %s2908_s26 }
0x1890   :  { %v1256_v51 = vpop.permute.xlu1 %1255 }
0x1891   :  { %v1258_v52 = vmul.f32 %v2724_v43, %v1256_v51 }
0x1893   :  { %1260 = vrot.lane.b32.xlu0 %v1258_v52, %s2909_s29 }
0x1905   :  { %v1261_v53 = vpop.permute.xlu0 %1260 }
0x1906   :  { %1263 = vst.msk [vmem:[#allocation2] sm:$0x3] %vm273_vm2, %v1261_v53  ;;  %2442 = vmatmul.mubr.msk.f32.vlgmr.msra.gmra.mrb[10].mxu1 %vm64_vm1, %v1261_v53 }
0x1907   :  { %2605 = vmatpush3.bf16.msra.mxu1 %v3155_v13  ;;  %2463 = vmatprep.mubr.msk.f32.mxu1 %vm2906_vm0, %v2907_v1 }
0x1908   :  { %2606 = vmatprep.subr.bf16.mxu1 %v2905_v0 }
0x190b   :  { %2608 = vmatpush3.bf16.msra.mxu1 %v3158_v24 }
0x190c   :  { %2615 = vmatprep.subr.bf16.mxu1 %v2905_v0 }
0x19d9   :  { %v1332_v54 = vpop.f32.mrb[10].mxu1 }
0x19da   :  { %v1337_v55 = vrot.slane %v1332_v54, 6  ;;  %v2443_v56 = vpop.f32.mrb[11].mxu1 }
0x19dc   :  { %v1339_v57 = vadd.f32 %v1337_v55, %v3196_v36 }
0x19de   :  { %2727 = vtanh.f32 %v1339_v57  ;;  %v1340_v59 = vsub.f32 0.0, %v1339_v57 }
0x19e0   :  { %v1341_v60 = vmul.f32 1.442695, %v1340_v59 }
0x19e2   :  { %2729 = vpow2.f32 %v1341_v60 }
0x19e8   :  { %v2728_v58 = vpop.eup %2727 }
0x19e9   :  { %1352 = vrot.lane.b32.xlu1 %v2728_v58, %s2908_s26 }
0x19ec   :  { %v2730_v61 = vpop.eup %2729 }
0x19ed   :  { %v1343_v63 = vadd.f32 1.0, %v2730_v61 }
0x19ef   :  { %2731 = vrcp.f32 %v1343_v63 }
0x19f9   :  { %v2732_v23 = vpop.eup %2731 }
0x19fa   :  { %v1350_v6 = vmul.f32 %v2732_v23, %v1348_v5 }
0x1a5b   :  { %v1353_v2 = vpop.permute.xlu1 %1352 }
0x1a5c   :  { %v1355_v3 = vmul.f32 %v2732_v23, %v1353_v2 }
0x1a5e   :  { %1357 = vrot.lane.b32.xlu0 %v1355_v3, %s2909_s29 }
0x1ad0   :  { %v1358_v62 = vpop.permute.xlu0 %1357 }
0x1ad1   :  { %v1360_v45 = vadd.f32 %v1358_v62, %v1350_v6 }
0x1ad3   :  { %2733 = vtanh.f32 %v1360_v45  ;;  %v1459_v28 = vrot.slane %v1360_v45, 6 }
0x1add   :  { %v2734_v7 = vpop.eup %2733 }
0x1ade   :  { %1363 = vrot.lane.b32.xlu1 %v2734_v7, %s2908_s26 }
0x1b50   :  { %v1364_v8 = vpop.permute.xlu1 %1363 }
0x1b51   :  { %v3215_v10 = vmul.f32 %v2732_v23, %v1364_v8 }
0x1b53   :  { %v1372_v11 = vrot.slane %v3215_v10, 2 }
0x1b55   :  { %1373 = vrot.lane.b32.xlu0 %v1372_v11, %s2909_s29 }
0x1bc7   :  { %v1374_v12 = vpop.permute.xlu0 %1373 }
0x1bc8   :  { %2453 = vmatmul.mubr.msk.f32.vlgmr.msra.gmra.mrb[12].mxu0 %vm64_vm1, %v1374_v12 }
0x1bc9   :  { %2611 = vmatpush3.bf16.msra.mxu0 %v3155_v13  ;;  %2474 = vmatprep.mubr.msk.f32.mxu0 %vm2906_vm0, %v2907_v1 }
0x1bca   :  { %2612 = vmatprep.subr.bf16.mxu0 %v2905_v0 }
0x1bcd   :  { %2614 = vmatpush3.bf16.msra.mxu0 %v3158_v24 }
0x1bce   :  { %2621 = vmatprep.subr.bf16.mxu0 %v2905_v0 }
0x1c9b   :  { %v1443_v9 = vpop.f32.mrb[12].mxu0 }
0x1c9c   :  { %v1448_v14 = vrot.slane %v1443_v9, 4  ;;  %v2454_v16 = vpop.f32.mrb[13].mxu0 }
0x1c9e   :  { %v1450_v17 = vadd.f32 %v1448_v14, %v3196_v36 }
0x1ca0   :  { %2735 = vtanh.f32 %v1450_v17  ;;  %v1451_v18 = vsub.f32 0.0, %v1450_v17 }
0x1ca2   :  { %v1452_v19 = vmul.f32 1.442695, %v1451_v18 }
0x1ca4   :  { %2737 = vpow2.f32 %v1452_v19 }
0x1caa   :  { %v2736_v15 = vpop.eup %2735 }
0x1cab   :  { %1463 = vrot.lane.b32.xlu1 %v2736_v15, %s2908_s26 }
0x1cae   :  { %v2738_v20 = vpop.eup %2737 }
0x1caf   :  { %v1454_v21 = vadd.f32 1.0, %v2738_v20 }
0x1cb1   :  { %2739 = vrcp.f32 %v1454_v21 }
0x1cbb   :  { %v2740_v22 = vpop.eup %2739 }
0x1cbc   :  { %v1461_v29 = vmul.f32 %v2740_v22, %v1459_v28 }
0x1d1d   :  { %v1464_v26 = vpop.permute.xlu1 %1463 }
0x1d1e   :  { %v1466_v27 = vmul.f32 %v2740_v22, %v1464_v26 }
0x1d20   :  { %1468 = vrot.lane.b32.xlu0 %v1466_v27, %s2909_s29 }
0x1d92   :  { %v1469_v30 = vpop.permute.xlu0 %1468 }
0x1d93   :  { %v1471_v31 = vadd.f32 %v1469_v30, %v1461_v29 }
0x1d95   :  { %2741 = vtanh.f32 %v1471_v31  ;;  %v1570_v51 = vrot.slane %v1471_v31, 6 }
0x1d9f   :  { %v2742_v32 = vpop.eup %2741 }
0x1da0   :  { %1474 = vrot.lane.b32.xlu1 %v2742_v32, %s2908_s26 }
0x1e12   :  { %v1475_v33 = vpop.permute.xlu1 %1474 }
0x1e13   :  { %v3230_v35 = vmul.f32 %v2740_v22, %v1475_v33 }
0x1e15   :  { %v1483_v37 = vrot.slane %v3230_v35, 4 }
0x1e17   :  { %1484 = vrot.lane.b32.xlu0 %v1483_v37, %s2909_s29 }
0x1e89   :  { %v1485_v38 = vpop.permute.xlu0 %1484 }
0x1e8a   :  { %2464 = vmatmul.mubr.msk.f32.vlgmr.msra.gmra.mrb[12].mxu1 %vm64_vm1, %v1485_v38 }
0x1e8b   :  { %2617 = vmatpush3.bf16.msra.mxu1 %v3155_v13  ;;  %2485 = vmatprep.mubr.msk.f32.mxu1 %vm2906_vm0, %v2907_v1 }
0x1e8c   :  { %2618 = vmatprep.subr.bf16.mxu1 %v2905_v0 }
0x1e8f   :  { %2620 = vmatpush3.bf16.msra.mxu1 %v3158_v24 }
0x1e90   :  { %2627 = vmatprep.subr.bf16.mxu1 %v2905_v0 }
0x1f5d   :  { %v1554_v39 = vpop.f32.mrb[12].mxu1 }
0x1f5e   :  { %v1559_v40 = vrot.slane %v1554_v39, 2  ;;  %v2465_v41 = vpop.f32.mrb[13].mxu1 }
0x1f60   :  { %v1561_v42 = vadd.f32 %v1559_v40, %v3196_v36 }
0x1f62   :  { %2743 = vtanh.f32 %v1561_v42  ;;  %v1562_v25 = vsub.f32 0.0, %v1561_v42 }
0x1f64   :  { %v1563_v44 = vmul.f32 1.442695, %v1562_v25 }
0x1f66   :  { %2745 = vpow2.f32 %v1563_v44 }
0x1f6c   :  { %v2744_v43 = vpop.eup %2743 }
0x1f6d   :  { %1574 = vrot.lane.b32.xlu1 %v2744_v43, %s2908_s26 }
0x1f70   :  { %v2746_v46 = vpop.eup %2745 }
0x1f71   :  { %v1565_v47 = vadd.f32 1.0, %v2746_v46 }
0x1f73   :  { %2747 = vrcp.f32 %v1565_v47 }
0x1f7d   :  { %v2748_v48 = vpop.eup %2747 }
0x1f7e   :  { %v1572_v52 = vmul.f32 %v2748_v48, %v1570_v51 }
0x1fdf   :  { %v1575_v49 = vpop.permute.xlu1 %1574 }
0x1fe0   :  { %v1577_v50 = vmul.f32 %v2748_v48, %v1575_v49 }
0x1fe2   :  { %1579 = vrot.lane.b32.xlu0 %v1577_v50, %s2909_s29 }
0x2054   :  { %v1580_v53 = vpop.permute.xlu0 %1579 }
0x2055   :  { %v1582_v54 = vadd.f32 %v1580_v53, %v1572_v52 }
0x2057   :  { %2749 = vtanh.f32 %v1582_v54  ;;  %v1678_v7 = vrot.slane %v1582_v54, 6 }
0x2061   :  { %v2750_v36 = vpop.eup %2749 }
0x2062   :  { %1585 = vrot.lane.b32.xlu1 %v2750_v36, %s2908_s26 }
0x20d4   :  { %v1586_v55 = vpop.permute.xlu1 %1585 }
0x20d5   :  { %v3245_v56 = vmul.f32 %v2748_v48, %v1586_v55 }
0x20d7   :  { %v1594_v57 = vrot.slane %v3245_v56, 6 }
0x20d9   :  { %1595 = vrot.lane.b32.xlu0 %v1594_v57, %s2909_s29 }
0x214b   :  { %v1596_v58 = vpop.permute.xlu0 %1595 }
0x214c   :  { %2475 = vmatmul.mubr.msk.f32.vlgmr.msra.gmra.mrb[14].mxu0 %vm64_vm1, %v1596_v58 }
0x214d   :  { %2623 = vmatpush3.bf16.msra.mxu0 %v3155_v13  ;;  %2496 = vmatprep.mubr.msk.f32.mxu0 %vm2906_vm0, %v2907_v1 }
0x214e   :  { %2624 = vmatprep.subr.bf16.mxu0 %v2905_v0 }
0x2151   :  { %2626 = vmatpush3.bf16.msra.mxu0 %v3158_v24 }
0x221f   :  { %v1665_v59 = vpop.f32.mrb[14].mxu0 }
0x2220   :  { %v1669_v60 = vadd.f32 %v1665_v59, %v3194_v34  ;;  %v2476_v61 = vpop.f32.mrb[15].mxu0 }
0x2222   :  { %2751 = vtanh.f32 %v1669_v60  ;;  %v1670_v23 = vsub.f32 0.0, %v1669_v60 }
0x2224   :  { %v1671_v2 = vmul.f32 1.442695, %v1670_v23 }
0x2226   :  { %2753 = vpow2.f32 %v1671_v2 }
0x222c   :  { %v2752_v63 = vpop.eup %2751 }
0x222d   :  { %1682 = vrot.lane.b32.xlu1 %v2752_v63, %s2908_s26 }
0x2230   :  { %v2754_v3 = vpop.eup %2753 }
0x2231   :  { %v1673_v5 = vadd.f32 1.0, %v2754_v3 }
0x2233   :  { %2755 = vrcp.f32 %v1673_v5 }
0x223d   :  { %v2756_v6 = vpop.eup %2755 }
0x223e   :  { %v1680_v8 = vmul.f32 %v2756_v6, %v1678_v7 }
0x229f   :  { %v1683_v62 = vpop.permute.xlu1 %1682 }
0x22a0   :  { %v1685_v45 = vmul.f32 %v2756_v6, %v1683_v62 }
0x22a2   :  { %1687 = vrot.lane.b32.xlu0 %v1685_v45, %s2909_s29 }
0x2314   :  { %v1688_v11 = vpop.permute.xlu0 %1687 }
0x2315   :  { %v1690_v12 = vadd.f32 %v1688_v11, %v1680_v8 }
0x2317   :  { %2757 = vtanh.f32 %v1690_v12 }
0x2321   :  { %v2758_v9 = vpop.eup %2757 }
0x2322   :  { %1693 = vrot.lane.b32.xlu1 %v2758_v9, %s2908_s26 }
0x2394   :  { %v1694_v14 = vpop.permute.xlu1 %1693 }
0x2395   :  { %v1696_v16 = vmul.f32 %v2756_v6, %v1694_v14 }
0x2397   :  { %1698 = vrot.lane.b32.xlu0 %v1696_v16, %s2909_s29 }
0x2409   :  { %v1699_v17 = vpop.permute.xlu0 %1698 }
0x240a   :  { %1701 = vst.msk [vmem:[#allocation2 + $0x8] sm:$0x3] %vm273_vm2, %v1699_v17  ;;  %2486 = vmatmul.mubr.msk.f32.vlgmr.msra.gmra.mrb[14].mxu1 %vm64_vm1, %v1699_v17 }
0x240b   :  { %2629 = vmatpush3.bf16.msra.mxu1 %v3155_v13  ;;  %2507 = vmatprep.mubr.msk.f32.mxu1 %vm2906_vm0, %v2907_v1 }
0x240c   :  { %2630 = vmatprep.subr.bf16.mxu1 %v2905_v0 }
0x240f   :  { %2632 = vmatpush3.bf16.msra.mxu1 %v3158_v24  ;;  %v1786_v24 = vrot.slane %v1690_v12, 6 }
0x24dd   :  { %v1770_v15 = vpop.f32.mrb[14].mxu1 }
0x24de   :  { %v1775_v18 = vrot.slane %v1770_v15, 6  ;;  %v2487_v19 = vpop.f32.mrb[15].mxu1 }
0x24e0   :  { %v1777_v20 = vadd.f32 %v1775_v18, %v3194_v34  ;;  %v2043_v18 = vld [vmem:[%s3374_s6 + $0x8] sm:$0xff] }
0x24e2   :  { %2759 = vtanh.f32 %v1777_v20  ;;  %v1778_v22 = vsub.f32 0.0, %v1777_v20  ;;  %v2044_v20 = vld [vmem:[%s3374_s6 + $0x10] sm:$0xff] }
0x24e4   :  { %v1779_v26 = vmul.f32 1.442695, %v1778_v22 }
0x24e6   :  { %2761 = vpow2.f32 %v1779_v26 }
0x24ec   :  { %v2760_v21 = vpop.eup %2759 }
0x24ed   :  { %1790 = vrot.lane.b32.xlu1 %v2760_v21, %s2908_s26 }
0x24f0   :  { %v2762_v13 = vpop.eup %2761 }
0x24f1   :  { %v1781_v27 = vadd.f32 1.0, %v2762_v13 }
0x24f3   :  { %2763 = vrcp.f32 %v1781_v27 }
0x24fd   :  { %v2764_v1 = vpop.eup %2763 }
0x24fe   :  { %v1788_v29 = vmul.f32 %v2764_v1, %v1786_v24 }
0x255f   :  { %v1791_v28 = vpop.permute.xlu1 %1790 }
0x2560   :  { %v1793_v0 = vmul.f32 %v2764_v1, %v1791_v28 }
0x2562   :  { %1795 = vrot.lane.b32.xlu0 %v1793_v0, %s2909_s29 }
0x25d4   :  { %v1796_v30 = vpop.permute.xlu0 %1795 }
0x25d5   :  { %v1798_v31 = vadd.f32 %v1796_v30, %v1788_v29 }
0x25d7   :  { %2765 = vtanh.f32 %v1798_v31  ;;  %v1897_v52 = vrot.slane %v1798_v31, 6 }
0x25e1   :  { %v2766_v32 = vpop.eup %2765 }
0x25e2   :  { %1801 = vrot.lane.b32.xlu1 %v2766_v32, %s2908_s26 }
0x2654   :  { %v1802_v33 = vpop.permute.xlu1 %1801 }
0x2655   :  { %v3271_v37 = vmul.f32 %v2764_v1, %v1802_v33 }
0x2657   :  { %v1810_v38 = vrot.slane %v3271_v37, 2 }
0x2659   :  { %1811 = vrot.lane.b32.xlu0 %v1810_v38, %s2909_s29 }
0x26cb   :  { %v1812_v39 = vpop.permute.xlu0 %1811 }
0x26cc   :  { %2497 = vmatmul.mubr.msk.f32.vlgmr.msra.gmra.mrb[16].mxu0 %vm64_vm1, %v1812_v39 }
0x279f   :  { %v1881_v40 = vpop.f32.mrb[16].mxu0 }
0x27a0   :  { %v1886_v41 = vrot.slane %v1881_v40, 4  ;;  %v2498_v42 = vpop.f32.mrb[17].mxu0 }
0x27a2   :  { %v1888_v43 = vadd.f32 %v1886_v41, %v3194_v34 }
0x27a4   :  { %2767 = vtanh.f32 %v1888_v43  ;;  %v1889_v44 = vsub.f32 0.0, %v1888_v43 }
0x27a6   :  { %v1890_v46 = vmul.f32 1.442695, %v1889_v44 }
0x27a8   :  { %2769 = vpow2.f32 %v1890_v46 }
0x27ae   :  { %v2768_v25 = vpop.eup %2767 }
0x27af   :  { %1901 = vrot.lane.b32.xlu1 %v2768_v25, %s2908_s26 }
0x27b2   :  { %v2770_v47 = vpop.eup %2769 }
0x27b3   :  { %v1892_v48 = vadd.f32 1.0, %v2770_v47 }
0x27b5   :  { %2771 = vrcp.f32 %v1892_v48 }
0x27bf   :  { %v2772_v49 = vpop.eup %2771 }
0x27c0   :  { %v1899_v53 = vmul.f32 %v2772_v49, %v1897_v52 }
0x2821   :  { %v1902_v50 = vpop.permute.xlu1 %1901 }
0x2822   :  { %v1904_v51 = vmul.f32 %v2772_v49, %v1902_v50 }
0x2824   :  { %1906 = vrot.lane.b32.xlu0 %v1904_v51, %s2909_s29 }
0x2896   :  { %v1907_v54 = vpop.permute.xlu0 %1906 }
0x2897   :  { %v1909_v36 = vadd.f32 %v1907_v54, %v1899_v53 }
0x2899   :  { %2773 = vtanh.f32 %v1909_v36 }
0x28a3   :  { %v2774_v55 = vpop.eup %2773 }
0x28a4   :  { %1912 = vrot.lane.b32.xlu1 %v2774_v55, %s2908_s26 }
0x2916   :  { %v1913_v57 = vpop.permute.xlu1 %1912 }
0x2917   :  { %v1915_v58 = vmul.f32 %v2772_v49, %v1913_v57 }
0x2919   :  { %v1921_v59 = vrot.slane %v1915_v58, 4 }
0x291b   :  { %1922 = vrot.lane.b32.xlu0 %v1921_v59, %s2909_s29 }
0x298d   :  { %v1923_v60 = vpop.permute.xlu0 %1922 }
0x298e   :  { %2508 = vmatmul.mubr.msk.f32.vlgmr.msra.gmra.mrb[16].mxu1 %vm64_vm1, %v1923_v60 }
0x2a61   :  { %v1992_v61 = vpop.f32.mrb[16].mxu1 }
0x2a62   :  { %v1997_v63 = vrot.slane %v1992_v61, 2  ;;  %v2509_v23 = vpop.f32.mrb[17].mxu1 }
0x2a64   :  { %v1999_v2 = vadd.f32 %v1997_v63, %v3194_v34  ;;  %v2008_v34 = vrot.slane %v1909_v36, 6 }
0x2a66   :  { %2775 = vtanh.f32 %v1999_v2  ;;  %v2000_v5 = vsub.f32 0.0, %v1999_v2 }
0x2a68   :  { %v2001_v6 = vmul.f32 1.442695, %v2000_v5 }
0x2a6a   :  { %2777 = vpow2.f32 %v2001_v6 }
0x2a70   :  { %v2776_v3 = vpop.eup %2775 }
0x2a71   :  { %2012 = vrot.lane.b32.xlu1 %v2776_v3, %s2908_s26 }
0x2a74   :  { %v2778_v62 = vpop.eup %2777 }
0x2a75   :  { %v2003_v45 = vadd.f32 1.0, %v2778_v62 }
0x2a77   :  { %2779 = vrcp.f32 %v2003_v45 }
0x2a81   :  { %v2780_v7 = vpop.eup %2779 }
0x2a82   :  { %v2010_v12 = vmul.f32 %v2780_v7, %v2008_v34 }
0x2ae3   :  { %v2013_v8 = vpop.permute.xlu1 %2012 }
0x2ae4   :  { %v2015_v11 = vmul.f32 %v2780_v7, %v2013_v8 }
0x2ae6   :  { %2017 = vrot.lane.b32.xlu0 %v2015_v11, %s2909_s29 }
0x2aea   :  { %1368 = vrot.lane.b32.xlu0 %v3215_v10, %s2909_s29 }
0x2aee   :  { %1590 = vrot.lane.b32.xlu0 %v3245_v56, %s2909_s29 }
0x2af2   :  { %1917 = vrot.lane.b32.xlu0 %v1915_v58, %s2909_s29 }
0x2af6   :  { %1048 = vrot.lane.b32.xlu0 %v3144_v4, %s2910_s5  ;;  %v2042_v4 = vld [vmem:[%s3374_s6] sm:$0xff] }
0x2af7   :  { %v2633_v19 = vpack.c.bf16 %v2043_v18, %v2042_v4 }
0x2af9   :  { %2634 = vmatprep.subr.bf16.mxu0 %v2633_v19 }
0x2afa   :  { %2636 = vmatpush3.bf16.msra.mxu0 %v2633_v19 }
0x2b58   :  { %v2018_v9 = vpop.permute.xlu0 %2017 }
0x2b59   :  { %v2020_v14 = vadd.f32 %v2018_v9, %v2010_v12 }
0x2b5b   :  { %2781 = vtanh.f32 %v2020_v14 }
0x2b5c   :  { %v1369_v16 = vpop.permute.xlu0 %1368 }
0x2b5d   :  { %1371 = vst.msk [vmem:[#allocation2] sm:$0xc] %vm382_vm3, %v1369_v16 }
0x2b60   :  { %v1591_v17 = vpop.permute.xlu0 %1590 }
0x2b61   :  { %1593 = vst.msk [vmem:[#allocation2] sm:$0xc0] %vm606_vm4, %v1591_v17 }
0x2b64   :  { %v1918_v10 = vpop.permute.xlu0 %1917 }
0x2b65   :  { %v2782_v15 = vpop.eup %2781  ;;  %1920 = vst.msk [vmem:[#allocation2 + $0x8] sm:$0x30] %vm494_vm5, %v1918_v10 }
0x2b66   :  { %2023 = vrot.lane.b32.xlu1 %v2782_v15, %s2908_s26 }
0x2b68   :  { %v1049_v56 = vpop.permute.xlu0 %1048 }
0x2b69   :  { %1051 = vst.msk [vmem:[#allocation11 - $0x6] sm:$0xc0] %vm606_vm4, %v1049_v56 }
0x2b6a   :  { %1479 = vrot.lane.b32.xlu1 %v3230_v35, %s2909_s29  ;;  %v2045_v35 = vld [vmem:[%s3374_s6 + $0x18] sm:$0xff]  ;;  %s2911_s6 = smov [#allocation9]  }
0x2b6b   :  { %v2637_v21 = vpack.c.bf16 %v2045_v35, %v2044_v20  ;;  %s2154_s20 = sshll.u32 %s2911_s6, 4  ;;  %s2155_s20 = int_to_ptr.vmem [resolvable:$true] %s2154_s20 }
0x2b6c   :  { %s2827_s21 = scalar_lea.vmem %s2155_s20, 64  ;;  %p2832_p3 = scmp.lt.s32.totalorder %s2155_s20, %s2155_s20 }
0x2b6d   :  { %2638 = vmatprep.subr.bf16.mxu0 %v2637_v21  ;;  %p2828_p2 = scmp.ne.s32.totalorder %s2155_s20, %s2827_s21  ;;  %p2833_p4 = scmp.lt.s32.totalorder %s2827_s21, %s2827_s21 }
0x2b6e   :  { %1806 = vrot.lane.b32.xlu1 %v3271_v37, %s2909_s29  ;;  %2640 = vmatpush3.bf16.msra.mxu0 %v2637_v21 }
0x2b6f   :  { %p2834_p5 = por %p2833_p4, %p2832_p3 }
0x2b71   :  { %p2835_p6 = pnand %p2834_p5, %p2828_p2 }
0x2bd8   :  { %v2024_v22 = vpop.permute.xlu1 %2023 }
0x2bd9   :  { %v2026_v26 = vmul.f32 %v2780_v7, %v2024_v22 }
0x2bdb   :  { %2028 = vrot.lane.b32.xlu1 %v2026_v26, %s2909_s29 }
0x2bdc   :  { %v1480_v13 = vpop.permute.xlu1 %1479 }
0x2bdd   :  { %1482 = vst.msk [vmem:[#allocation2] sm:$0x30] %vm494_vm5, %v1480_v13 }
0x2bdf   :  { %2035 = vrot.lane.b32.xlu1 %v2020_v14, %s2910_s5 }
0x2be0   :  { %v1807_v27 = vpop.permute.xlu1 %1806 }
0x2be1   :  { %1809 = vst.msk [vmem:[#allocation2 + $0x8] sm:$0xc] %vm382_vm3, %v1807_v27 }
0x2be4   :  { %v2040_v1 = vld [vmem:[#allocation2] sm:$0xff] }
0x2be5   :  { %2518 = vmatprep.mubr.msk.f32.mxu0 %vm64_vm1, %v2040_v1 }
0x2c4d   :  { %v2029_v28 = vpop.permute.xlu1 %2028 }
0x2c4e   :  { %2031 = vst.msk [vmem:[#allocation2 + $0x8] sm:$0xc0] %vm606_vm4, %v2029_v28  ;;  %2033 = vst.msk [vmem:[#allocation9 - $0x4] sm:$0xc0] %vm606_vm4, %v2029_v28 }
0x2c51   :  { %v2036_v0 = vpop.permute.xlu1 %2035 }
0x2c52   :  { %2039 = vst.msk [vmem:[#allocation11 - $0x4] sm:$0xc0] %vm606_vm4, %v2036_v0 }
0x2c55   :  { %v2041_v24 = vld [vmem:[#allocation2 + $0x8] sm:$0xff] }
0x2c56   :  { %2519 = vmatmul.mubr.msk.f32.vlgmr.msra.gmra.mrb[18].mxu0 %vm64_vm1, %v2041_v24 }
0x2c57   :  { %2838 = shalt.err (!%p2835_p6)
}
0x2c58   :  { %s2839_s25 = scalar_lea.hbm %s3377_s9, 64 }
0x2c59   :  { %p2840_p7 = scmp.ne.s32.totalorder %s3377_s9, %s2839_s25  ;;  %p2843_p8 = scmp.lt.u32.totalorder %s2839_s25, %s3377_s9 }
0x2c5b   :  { %p2845_p9 = pnand %p2843_p8, %p2840_p7 }
0x2c5d   :  { %2848 = shalt.err (!%p2845_p9)
}
0x2c5e   :  { %s2912_s11 = smov 2   ;;  %s2913_s1 = smov [#allocation11]  }
0x2c5f   :  { %2160 = dma.vmem_to_hbm [thread:$0]  %s2155_s20, 64, %s3377_s9, [#allocation10], %s2909_s29, %s2909_s29, %s2912_s11  }
0x2c60   :  { %s2166_s2 = sshll.u32 %s2913_s1, 4  ;;  %s2167_s2 = int_to_ptr.vmem [resolvable:$true] %s2166_s2 }
0x2c61   :  { %s2849_s5 = scalar_lea.vmem %s2167_s2, 64  ;;  %p2854_p11 = scmp.lt.s32.totalorder %s2167_s2, %s2167_s2 }
0x2c62   :  { %p2850_p10 = scmp.ne.s32.totalorder %s2167_s2, %s2849_s5  ;;  %p2855_p12 = scmp.lt.s32.totalorder %s2849_s5, %s2849_s5 }
0x2c64   :  { %p2856_p13 = por %p2855_p12, %p2854_p11 }
0x2c66   :  { %p2857_p0 = pnand %p2856_p13, %p2850_p10 }
0x2c68   :  { %2860 = shalt.err (!%p2857_p0)
}
0x2c69   :  { %s2861_s17 = scalar_lea.hbm %s3378_s10, 64 }
0x2c6a   :  { %p2862_p1 = scmp.ne.s32.totalorder %s3378_s10, %s2861_s17  ;;  %p2865_p2 = scmp.lt.u32.totalorder %s2861_s17, %s3378_s10 }
0x2c6c   :  { %p2867_p3 = pnand %p2865_p2, %p2862_p1 }
0x2c6e   :  { %2870 = shalt.err (!%p2867_p3)
}
0x2c6f   :  { %2172 = dma.vmem_to_hbm [thread:$0]  %s2167_s2, 64, %s3378_s10, [#allocation10], %s2909_s29, %s2909_s29, %s2912_s11   ;;  %vm2134_vm6 = vcmask 130048  }
0x2c70   :  { %v2211_v29 = vld [vmem:[%s3375_s7] ss:$0 sm:$0xff]  ;;  %s2914_s21 = smov [#allocation8]  }
0x2c71   :  { %s2142_s22 = sshll.u32 %s2914_s21, 4  ;;  %s2143_s22 = int_to_ptr.vmem [resolvable:$true] %s2142_s22 }
0x2c72   :  { %s2871_s0 = scalar_lea.vmem %s2143_s22, 256  ;;  %p2876_p5 = scmp.lt.s32.totalorder %s2143_s22, %s2143_s22 }
0x2c73   :  { %p2872_p4 = scmp.ne.s32.totalorder %s2143_s22, %s2871_s0  ;;  %p2877_p6 = scmp.lt.s32.totalorder %s2871_s0, %s2871_s0 }
0x2c75   :  { %p2878_p7 = por %p2877_p6, %p2876_p5 }
0x2c77   :  { %p2879_p8 = pnand %p2878_p7, %p2872_p4 }
0x2d29   :  { %v2520_v30 = vpop.f32.mrb[18].mxu0 }
0x2d2a   :  { %v2131_v31 = vadd.f32 %v2520_v30, %v2211_v29  ;;  %v2125_v32 = vpop.f32.mrb[19].mxu0 }
0x2d2b   :  { %v2126_v33 = vadd.f32 %v2211_v29, %v2125_v32 }
0x2d2c   :  { %2136 = vst.msk [vmem:[#allocation8 + $0x8] sm:$0xff] %vm2134_vm6, %v2131_v31 }
0x2d2d   :  { %2135 = vst.msk [vmem:[#allocation8] sm:$0xff] %vm2134_vm6, %v2126_v33 }
0x2d2e   :  { %2882 = shalt.err (!%p2879_p8)
}
0x2d2f   :  { %s2883_s7 = scalar_lea.hbm %s3376_s8, 256 }
0x2d30   :  { %p2884_p9 = scmp.ne.s32.totalorder %s3376_s8, %s2883_s7  ;;  %p2887_p10 = scmp.lt.u32.totalorder %s2883_s7, %s3376_s8 }
0x2d32   :  { %p2889_p11 = pnand %p2887_p10, %p2884_p9 }
0x2d34   :  { %2892 = shalt.err (!%p2889_p11)
}
0x2d35   :  { %2148 = dma.vmem_to_hbm [thread:$0]  %s2143_s22, 256, %s3376_s8, [#allocation5], %s2902_s23, %s2902_s23, %s2903_s24  }
0x2d36   :  { %2897 = dma.done.wait [#allocation5], 256  }
0x2d37   :  { %2898 = vsyncadd [#allocation5], 4294967040 }
0x2d38   :  { %2899 = dma.done.wait [#allocation10], 128  }
0x2d39   :  { %2900 = vsyncadd [#allocation10], 4294967168 }
0x2d3a   :  { %2182 = vsyncpa [#allocation4], 1 }
0x2d3b   :  { %2183 = vsyncpa [#allocation7], 1 }
0x2d3c   :  { %2184 = vsyncpa [#allocation5], 1 }
0x2d3d   :  { %2185 = vsyncpa [#allocation10], 1 }

</bundles_post_ra>
